<compile_context>
chip_gen: v7x
topology: tpu7x:2x2x1
jax: 0.10.0
libtpu: 0.0.40
codegen_flags: <defaults>
</compile_context>

<pallas_src>
import jax
import jax.numpy as jnp
from jax import lax
from jax.experimental import pallas as pl
from jax.experimental.pallas import tpu as pltpu

# ---------------- model sizes (small, deterministic stand-in) ----------------
B = 2            # batch
L = 16           # total sequence length
T = 16           # chunk length per grid step; T == L -> single chunk
D = 32           # hidden size  # TODO(synk): real cells should keep D lane-dense (mult of 128)
V = 128          # vocab size (lane-dense)
FIRST_SEG_LEN = 8     # rmt_config['first_seg_len']; recurrence makes uniform chunking equivalent
BATCH_GROUPS = 1      # 1 = fold whole batch into each matmul (single-TC v5e/v6e);
                      # set 2 on v7x so the 'parallel' axis maps one row-group per TensorCore.


def _rmt_kernel(x_ref, lbl_ref, wx_ref, wh_ref, b_ref, wo_ref,
                logits_ref, nll_ref, h_state):
    """One grid step = T timesteps of one batch row-group (all rows batched).

    x_ref      : (R, T, D) bf16   chunk of token embeddings (R = rows per group)
    lbl_ref    : (R, 1, T) int32  shifted target ids, T on the lane axis; -1 = masked
    wx/wh_ref  : (D, D)    bf16   recurrence weights (VMEM resident)
    b_ref      : (1, D)    f32    recurrence bias
    wo_ref     : (D, V)    bf16   lm head (VMEM resident)
    logits_ref : (R, T, V) bf16   output logits chunk (bf16 halves HBM writeback)
    nll_ref    : (R, 1, T) f32    per-token CE contribution (0 where masked), lane-dense
    h_state    : (R, D)    f32    VMEM scratch: memory state carried across chunks
    """
    # Chunk axis MUST stay innermost + "arbitrary": the h_state carry and this
    # reset depend on serial chunk iteration within each row-group.
    c = pl.program_id(1)

    @pl.when(c == 0)
    def _init():
        # memory_state = None on the first segment -> zeros (re-fires per row-group)
        h_state[...] = jnp.zeros_like(h_state)

    x = x_ref[...]                                   # (R, T, D) bf16
    R, Tc, Dd = x.shape
    wx, wh, wo = wx_ref[...], wh_ref[...], wo_ref[...]
    bias = b_ref[...]                                # (1, D) f32 — hoisted broadcast
    Vv = wo.shape[1]

    # Hoisted input projection: one (R*T, D) @ (D, D) MXU matmul for the whole chunk.
    xw = (jnp.dot(x.reshape(R * Tc, Dd), wx, preferred_element_type=jnp.float32)
          + bias).reshape(R, Tc, Dd)                 # f32

    # Serial recurrence: only h @ Wh is on the latency-critical chain; the whole
    # row-group rides in one (R, D) @ (D, D) matmul per step.  Hidden states stay
    # in registers (list + one concat) — no VMEM store->load round trip.
    # TODO(synk): at larger T use lax.fori_loop(..., unroll=8/16) to bound code size.
    h = h_state[...]                                 # (R, D) f32
    hs = []
    for t in range(Tc):                              # static trip count, fully unrolled
        h = jnp.tanh(xw[:, t, :] +
                     jnp.dot(h.astype(jnp.bfloat16), wh,
                             preferred_element_type=jnp.float32))
        hs.append(h)
    h_state[...] = h                                 # carry memory state to next chunk
    hid = jnp.concatenate([hh[:, None, :] for hh in hs], axis=1)   # (R, T, D) f32

    # ----- lm head: one (R*T, D) @ (D, V) matmul -----
    logits = jnp.dot(hid.reshape(R * Tc, Dd).astype(jnp.bfloat16), wo,
                     preferred_element_type=jnp.float32).reshape(R, Tc, Vv)  # f32
    logits_ref[...] = logits.astype(logits_ref.dtype)   # bf16 store; CE uses f32 below

    # ----- shifted cross-entropy, label-index form (no (T, V) one-hot DMA) -----
    lbl = lbl_ref[...][:, 0, :]                      # (R, T) int32
    valid = (lbl >= 0).astype(jnp.float32)           # (R, T)
    col = lax.broadcasted_iota(jnp.int32, (R, Tc, Vv), 2)
    picked = jnp.sum(jnp.where(col == lbl[:, :, None], logits, 0.0), axis=-1)  # (R, T)
    m = jnp.max(logits, axis=-1)                                              # (R, T)
    lse = jnp.log(jnp.sum(jnp.exp(logits - m[:, :, None]), axis=-1)) + m
    nll_ref[...] = (valid * (lse - picked))[:, None, :]   # lane-dense (T on lanes)


def recurrent_wrapper_forward(input_ids, labels, params, labels_mask=None,
                              batch_groups=BATCH_GROUPS):
    """Pallas implementation of RecurrentWrapper.forward (loss + logits)."""
    emb, wx, wh, bias, wo = params
    Bv, Lv = input_ids.shape
    assert Lv % T == 0 and Bv % batch_groups == 0
    C = Lv // T                      # chunks (innermost, serial -> state carry)
    G = batch_groups                 # row-groups (outer, parallel)
    R = Bv // G                      # rows batched into each matmul

    # glue: embedding gather (bf16 — MXU-native, halves activation DMA)
    x_emb = emb[input_ids].astype(jnp.bfloat16)                            # (B, L, D)

    # shifted targets: logits at position t predict labels[t+1]; -1 = no target.
    if labels is not None:
        lbl_shift = jnp.concatenate(
            [labels[:, 1:], jnp.full((Bv, 1), -1, labels.dtype)], axis=1)  # (B, L)
        if labels_mask is not None:
            # torch: shift_mask = labels_mask[..., :-1] gates logits position t
            # with labels_mask[t] (un-shifted), so pad a False at the end.
            keep = jnp.concatenate(
                [labels_mask[:, :-1], jnp.zeros((Bv, 1), dtype=bool)], axis=1)
            lbl_shift = jnp.where(keep, lbl_shift, -1)
    else:
        lbl_shift = jnp.full((Bv, Lv), -1, jnp.int32)
    lbl_shift = lbl_shift.astype(jnp.int32)
    # Defensive: out-of-range ids are masked (torch CrossEntropyLoss would raise);
    # avoids silent picked=0 inflating the loss.
    lbl_shift = jnp.where((lbl_shift >= 0) & (lbl_shift < V), lbl_shift, -1)
    lbl_shift = lbl_shift.reshape(Bv, C, T)        # T on the lane axis (lane-dense I/O)

    # grid = (row-group [parallel], chunk [arbitrary]); the chunk axis must stay
    # innermost and serial — the h_state carry + reset at c == 0 depend on it.
    grid = (G, C)

    logits, nll = pl.pallas_call(
        _rmt_kernel,
        out_shape=(jax.ShapeDtypeStruct((Bv, Lv, V), jnp.bfloat16),
                   jax.ShapeDtypeStruct((Bv, C, T), jnp.float32)),
        grid_spec=pltpu.PrefetchScalarGridSpec(
            num_scalar_prefetch=0,
            grid=grid,
            in_specs=[
                pl.BlockSpec((R, T, D), lambda g, c: (g, c, 0)),   # x_emb chunk (bf16)
                pl.BlockSpec((R, 1, T), lambda g, c: (g, c, 0)),   # shifted labels (int32)
                pl.BlockSpec((D, D), lambda g, c: (0, 0)),         # Wx (resident, bf16)
                pl.BlockSpec((D, D), lambda g, c: (0, 0)),         # Wh (resident, bf16)
                pl.BlockSpec((1, D), lambda g, c: (0, 0)),         # bias (f32)
                pl.BlockSpec((D, V), lambda g, c: (0, 0)),         # Wo (resident, bf16)
                # TODO(synk): at real vocab sizes on v7x (64 MiB VMEM), add a vocab
                # grid axis for the lm head + online-logsumexp CE and mark the
                # constant-index weight specs pipeline_mode=pl.Buffered(1).
            ],
            out_specs=[
                pl.BlockSpec((R, T, V), lambda g, c: (g, c, 0)),   # bf16 logits chunk
                pl.BlockSpec((R, 1, T), lambda g, c: (g, c, 0)),   # lane-dense NLL
            ],
            scratch_shapes=[
                pltpu.VMEM((R, D), jnp.float32),   # memory-state carry across chunks
            ],
        ),
        compiler_params=pltpu.CompilerParams(
            # row-groups are independent -> parallel (v7x: one per TensorCore);
            # chunk axis carries state -> arbitrary (serial).
            dimension_semantics=("parallel", "arbitrary"),
            vmem_limit_bytes=48 * 1024 * 1024),    # explicit; leaves headroom on v7x
    )(x_emb, lbl_shift,
      wx.astype(jnp.bfloat16), wh.astype(jnp.bfloat16),
      bias, wo.astype(jnp.bfloat16))

    if labels is not None:
        count = jnp.maximum(jnp.sum((lbl_shift >= 0).astype(jnp.float32)), 1.0)
        loss = jnp.sum(nll) / count        # CrossEntropyLoss mean over valid tokens
    else:
        loss = jnp.float32(0.0)

    # logits returned in bf16 (per perf review); cast host-side if f32 is required.
    return {"loss": loss, "ce_loss": loss, "logits": logits}


def _reference_forward(input_ids, labels, params, labels_mask=None,
                       matmul_dtype=jnp.float32):
    """Pure-JAX reference reproducing the PyTorch semantics.

    matmul_dtype=bf16 mirrors the kernel's MXU-input precision (tight check);
    matmul_dtype=f32 is the full-precision module semantics (loose check).
    """
    emb, wx, wh, bias, wo = params
    x = emb[input_ids].astype(matmul_dtype)
    wx = wx.astype(matmul_dtype); wh = wh.astype(matmul_dtype); wo = wo.astype(matmul_dtype)
    Bv, Lv = input_ids.shape
    h = jnp.zeros((Bv, D), jnp.float32)
    outs = []
    for t in range(Lv):
        h = jnp.tanh(jnp.dot(x[:, t], wx, preferred_element_type=jnp.float32)
                     + jnp.dot(h.astype(matmul_dtype), wh, preferred_element_type=jnp.float32)
                     + bias)
        outs.append(jnp.dot(h.astype(matmul_dtype), wo, preferred_element_type=jnp.float32))
    logits = jnp.stack(outs, axis=1)                        # (B, L, V) f32
    shift_logits = logits[:, :-1, :]
    shift_labels = labels[:, 1:]
    lse = jax.nn.logsumexp(shift_logits, axis=-1)
    picked = jnp.take_along_axis(shift_logits, shift_labels[..., None], axis=-1)[..., 0]
    per_tok = lse - picked                                   # (B, L-1)
    if labels_mask is not None:
        m = labels_mask[:, :-1].astype(jnp.float32)          # torch: shift_mask = labels_mask[..., :-1]
        loss = jnp.sum(per_tok * m) / jnp.maximum(jnp.sum(m), 1.0)
    else:
        loss = jnp.mean(per_tok)
    return loss, logits


def _init_params(key):
    k1, k2, k3, k4, k5 = jax.random.split(key, 5)
    scale = 1.0 / jnp.sqrt(jnp.float32(D))
    emb = jax.random.normal(k1, (V, D), jnp.float32) * scale
    wx = jax.random.normal(k2, (D, D), jnp.float32) * scale
    wh = jax.random.normal(k3, (D, D), jnp.float32) * scale
    bias = jax.random.normal(k4, (1, D), jnp.float32) * 0.01
    wo = jax.random.normal(k5, (D, V), jnp.float32) * scale
    return emb, wx, wh, bias, wo


if __name__ == "__main__":
    key = jax.random.PRNGKey(0)
    kp, ki, kl, km = jax.random.split(key, 4)

    params = _init_params(kp)
    input_ids = jax.random.randint(ki, (B, L), 0, V, dtype=jnp.int32)
    labels = jax.random.randint(kl, (B, L), 0, V, dtype=jnp.int32)

    out = recurrent_wrapper_forward(input_ids, labels, params)
    jax.block_until_ready(out["logits"])
    jax.block_until_ready(out["loss"])

    logits_f32 = out["logits"].astype(jnp.float32)

    # Structural check vs a reference with the same bf16 MXU-input precision
    # (tolerances absorb the bf16 quantization of the stored logits).
    q_loss, q_logits = _reference_forward(input_ids, labels, params,
                                          matmul_dtype=jnp.bfloat16)
    assert jnp.allclose(logits_f32, q_logits, rtol=2e-2, atol=2e-2), "logits mismatch (bf16 ref)"
    assert jnp.allclose(out["loss"], q_loss, rtol=1e-3, atol=1e-3), "loss mismatch (bf16 ref)"

    # Semantic check vs the full-f32 module semantics (bf16 input + output drift).
    f_loss, f_logits = _reference_forward(input_ids, labels, params,
                                          matmul_dtype=jnp.float32)
    assert jnp.allclose(logits_f32, f_logits, rtol=8e-2, atol=8e-2), "logits drift vs f32 ref"
    assert jnp.allclose(out["loss"], f_loss, rtol=2e-2, atol=2e-2), "loss drift vs f32 ref"

    # labels_mask path (torch convention: shift_mask = labels_mask[..., :-1]).
    labels_mask = jax.random.bernoulli(km, 0.7, (B, L))
    out_m = recurrent_wrapper_forward(input_ids, labels, params, labels_mask=labels_mask)
    jax.block_until_ready(out_m["loss"])
    qm_loss, _ = _reference_forward(input_ids, labels, params, labels_mask=labels_mask,
                                    matmul_dtype=jnp.bfloat16)
    assert jnp.allclose(out_m["loss"], qm_loss, rtol=1e-3, atol=1e-3), "masked loss mismatch"

    print("KERNEL_OK")
</pallas_src>

<mosaic_0001>
module attributes {stable_mosaic.version = 11 : i64} {
  func.func @_rmt_kernel(%arg0: i32, %arg1: i32, %arg2: memref<2x16x32xbf16, #tpu.memory_space<vmem>>, %arg3: memref<2x1x16xi32, #tpu.memory_space<vmem>>, %arg4: memref<32x32xbf16, #tpu.memory_space<vmem>>, %arg5: memref<32x32xbf16, #tpu.memory_space<vmem>>, %arg6: memref<1x32xf32, #tpu.memory_space<vmem>>, %arg7: memref<32x128xbf16, #tpu.memory_space<vmem>>, %arg8: memref<2x16x128xbf16, #tpu.memory_space<vmem>>, %arg9: memref<2x1x16xf32, #tpu.memory_space<vmem>>, %arg10: memref<2x32xf32, #tpu.memory_space<vmem>>) attributes {dimension_semantics = [#tpu.dimension_semantics<parallel>, #tpu.dimension_semantics<arbitrary>], iteration_bounds = array<i64: 1, 1>, scalar_prefetch = 0 : i64, scratch_operands = 1 : i64, tpu.core_type = #tpu.core_type<tc>, window_params = [{transform_indices = @transform_0, window_bounds = array<i64: 2, 16, 32>}, {transform_indices = @transform_1, window_bounds = array<i64: 2, 1, 16>}, {pipeline_mode = #tpu.pipeline_mode<synchronous>, transform_indices = @transform_2, window_bounds = array<i64: 32, 32>}, {pipeline_mode = #tpu.pipeline_mode<synchronous>, transform_indices = @transform_3, window_bounds = array<i64: 32, 32>}, {pipeline_mode = #tpu.pipeline_mode<synchronous>, transform_indices = @transform_4, window_bounds = array<i64: 1, 32>}, {pipeline_mode = #tpu.pipeline_mode<synchronous>, transform_indices = @transform_5, window_bounds = array<i64: 32, 128>}, {transform_indices = @transform_6, window_bounds = array<i64: 2, 16, 128>}, {transform_indices = @transform_7, window_bounds = array<i64: 2, 1, 16>}]} {
    %c0_i32 = arith.constant 0 : i32
    %0 = arith.cmpi eq, %arg1, %c0_i32 : i32
    %1 = arith.extui %0 : i1 to i32
    %c0_i32_0 = arith.constant 0 : i32
    %2 = arith.cmpi ne, %1, %c0_i32_0 : i32
    scf.if %2 {
      %cst_46 = arith.constant 0.000000e+00 : f32
      %159 = vector.broadcast %cst_46 : f32 to vector<2x32xf32>
      %c0_47 = arith.constant 0 : index
      %c0_48 = arith.constant 0 : index
      %160 = vector.load %arg10[%c0_47, %c0_48] : memref<2x32xf32, #tpu.memory_space<vmem>>, vector<2x32xf32>
      tpu.vector_store %arg10[%c0_47, %c0_48], %159 {strides = array<i32>} : memref<2x32xf32, #tpu.memory_space<vmem>>, vector<2x32xf32>,
    } else {
    }
    %c0 = arith.constant 0 : index
    %c0_1 = arith.constant 0 : index
    %c0_2 = arith.constant 0 : index
    %3 = vector.load %arg2[%c0, %c0_1, %c0_2] : memref<2x16x32xbf16, #tpu.memory_space<vmem>>, vector<2x16x32xbf16>
    %c0_3 = arith.constant 0 : index
    %c0_4 = arith.constant 0 : index
    %4 = vector.load %arg4[%c0_3, %c0_4] : memref<32x32xbf16, #tpu.memory_space<vmem>>, vector<32x32xbf16>
    %c0_5 = arith.constant 0 : index
    %c0_6 = arith.constant 0 : index
    %5 = vector.load %arg5[%c0_5, %c0_6] : memref<32x32xbf16, #tpu.memory_space<vmem>>, vector<32x32xbf16>
    %c0_7 = arith.constant 0 : index
    %c0_8 = arith.constant 0 : index
    %6 = vector.load %arg7[%c0_7, %c0_8] : memref<32x128xbf16, #tpu.memory_space<vmem>>, vector<32x128xbf16>
    %c0_9 = arith.constant 0 : index
    %c0_10 = arith.constant 0 : index
    %7 = vector.load %arg6[%c0_9, %c0_10] : memref<1x32xf32, #tpu.memory_space<vmem>>, vector<1x32xf32>
    %8 = vector.shape_cast %3 : vector<2x16x32xbf16> to vector<32x32xbf16>
    %cst = arith.constant dense<0.000000e+00> : vector<32x32xf32>
    %9 = tpu.matmul %8, %4, %cst {dimension_numbers = #tpu.dot_dimension_numbers<[1], [0], [0], [1], [0, 0, 1, 1], [], []>} : vector<32x32xbf16>, vector<32x32xbf16>, vector<32x32xf32> -> vector<32x32xf32>
    %10 = vector.broadcast %7 : vector<1x32xf32> to vector<32x32xf32>
    %11 = arith.addf %9, %10 : vector<32x32xf32>
    %12 = vector.shape_cast %11 : vector<32x32xf32> to vector<2x16x32xf32>
    %c0_11 = arith.constant 0 : index
    %c0_12 = arith.constant 0 : index
    %13 = vector.load %arg10[%c0_11, %c0_12] : memref<2x32xf32, #tpu.memory_space<vmem>>, vector<2x32xf32>
    %14 = vector.extract_strided_slice %12 {offsets = [0, 0, 0], sizes = [2, 1, 32], strides = [1, 1, 1]} : vector<2x16x32xf32> to vector<2x1x32xf32>
    %15 = vector.shape_cast %14 : vector<2x1x32xf32> to vector<2x32xf32>
    %16 = arith.truncf %13 : vector<2x32xf32> to vector<2x32xbf16>
    %cst_13 = arith.constant dense<0.000000e+00> : vector<2x32xf32>
    %17 = tpu.matmul %16, %5, %cst_13 {dimension_numbers = #tpu.dot_dimension_numbers<[1], [0], [0], [1], [0, 0, 1, 1], [], []>} : vector<2x32xbf16>, vector<32x32xbf16>, vector<2x32xf32> -> vector<2x32xf32>
    %18 = arith.addf %15, %17 : vector<2x32xf32>
    %19 = math.tanh %18 : vector<2x32xf32>
    %20 = vector.extract_strided_slice %12 {offsets = [0, 1, 0], sizes = [2, 1, 32], strides = [1, 1, 1]} : vector<2x16x32xf32> to vector<2x1x32xf32>
    %21 = vector.shape_cast %20 : vector<2x1x32xf32> to vector<2x32xf32>
    %22 = arith.truncf %19 : vector<2x32xf32> to vector<2x32xbf16>
    %cst_14 = arith.constant dense<0.000000e+00> : vector<2x32xf32>
    %23 = tpu.matmul %22, %5, %cst_14 {dimension_numbers = #tpu.dot_dimension_numbers<[1], [0], [0], [1], [0, 0, 1, 1], [], []>} : vector<2x32xbf16>, vector<32x32xbf16>, vector<2x32xf32> -> vector<2x32xf32>
    %24 = arith.addf %21, %23 : vector<2x32xf32>
    %25 = math.tanh %24 : vector<2x32xf32>
    %26 = vector.extract_strided_slice %12 {offsets = [0, 2, 0], sizes = [2, 1, 32], strides = [1, 1, 1]} : vector<2x16x32xf32> to vector<2x1x32xf32>
    %27 = vector.shape_cast %26 : vector<2x1x32xf32> to vector<2x32xf32>
    %28 = arith.truncf %25 : vector<2x32xf32> to vector<2x32xbf16>
    %cst_15 = arith.constant dense<0.000000e+00> : vector<2x32xf32>
    %29 = tpu.matmul %28, %5, %cst_15 {dimension_numbers = #tpu.dot_dimension_numbers<[1], [0], [0], [1], [0, 0, 1, 1], [], []>} : vector<2x32xbf16>, vector<32x32xbf16>, vector<2x32xf32> -> vector<2x32xf32>
    %30 = arith.addf %27, %29 : vector<2x32xf32>
    %31 = math.tanh %30 : vector<2x32xf32>
    %32 = vector.extract_strided_slice %12 {offsets = [0, 3, 0], sizes = [2, 1, 32], strides = [1, 1, 1]} : vector<2x16x32xf32> to vector<2x1x32xf32>
    %33 = vector.shape_cast %32 : vector<2x1x32xf32> to vector<2x32xf32>
    %34 = arith.truncf %31 : vector<2x32xf32> to vector<2x32xbf16>
    %cst_16 = arith.constant dense<0.000000e+00> : vector<2x32xf32>
    %35 = tpu.matmul %34, %5, %cst_16 {dimension_numbers = #tpu.dot_dimension_numbers<[1], [0], [0], [1], [0, 0, 1, 1], [], []>} : vector<2x32xbf16>, vector<32x32xbf16>, vector<2x32xf32> -> vector<2x32xf32>
    %36 = arith.addf %33, %35 : vector<2x32xf32>
    %37 = math.tanh %36 : vector<2x32xf32>
    %38 = vector.extract_strided_slice %12 {offsets = [0, 4, 0], sizes = [2, 1, 32], strides = [1, 1, 1]} : vector<2x16x32xf32> to vector<2x1x32xf32>
    %39 = vector.shape_cast %38 : vector<2x1x32xf32> to vector<2x32xf32>
    %40 = arith.truncf %37 : vector<2x32xf32> to vector<2x32xbf16>
    %cst_17 = arith.constant dense<0.000000e+00> : vector<2x32xf32>
    %41 = tpu.matmul %40, %5, %cst_17 {dimension_numbers = #tpu.dot_dimension_numbers<[1], [0], [0], [1], [0, 0, 1, 1], [], []>} : vector<2x32xbf16>, vector<32x32xbf16>, vector<2x32xf32> -> vector<2x32xf32>
    %42 = arith.addf %39, %41 : vector<2x32xf32>
    %43 = math.tanh %42 : vector<2x32xf32>
    %44 = vector.extract_strided_slice %12 {offsets = [0, 5, 0], sizes = [2, 1, 32], strides = [1, 1, 1]} : vector<2x16x32xf32> to vector<2x1x32xf32>
    %45 = vector.shape_cast %44 : vector<2x1x32xf32> to vector<2x32xf32>
    %46 = arith.truncf %43 : vector<2x32xf32> to vector<2x32xbf16>
    %cst_18 = arith.constant dense<0.000000e+00> : vector<2x32xf32>
    %47 = tpu.matmul %46, %5, %cst_18 {dimension_numbers = #tpu.dot_dimension_numbers<[1], [0], [0], [1], [0, 0, 1, 1], [], []>} : vector<2x32xbf16>, vector<32x32xbf16>, vector<2x32xf32> -> vector<2x32xf32>
    %48 = arith.addf %45, %47 : vector<2x32xf32>
    %49 = math.tanh %48 : vector<2x32xf32>
    %50 = vector.extract_strided_slice %12 {offsets = [0, 6, 0], sizes = [2, 1, 32], strides = [1, 1, 1]} : vector<2x16x32xf32> to vector<2x1x32xf32>
    %51 = vector.shape_cast %50 : vector<2x1x32xf32> to vector<2x32xf32>
    %52 = arith.truncf %49 : vector<2x32xf32> to vector<2x32xbf16>
    %cst_19 = arith.constant dense<0.000000e+00> : vector<2x32xf32>
    %53 = tpu.matmul %52, %5, %cst_19 {dimension_numbers = #tpu.dot_dimension_numbers<[1], [0], [0], [1], [0, 0, 1, 1], [], []>} : vector<2x32xbf16>, vector<32x32xbf16>, vector<2x32xf32> -> vector<2x32xf32>
    %54 = arith.addf %51, %53 : vector<2x32xf32>
    %55 = math.tanh %54 : vector<2x32xf32>
    %56 = vector.extract_strided_slice %12 {offsets = [0, 7, 0], sizes = [2, 1, 32], strides = [1, 1, 1]} : vector<2x16x32xf32> to vector<2x1x32xf32>
    %57 = vector.shape_cast %56 : vector<2x1x32xf32> to vector<2x32xf32>
    %58 = arith.truncf %55 : vector<2x32xf32> to vector<2x32xbf16>
    %cst_20 = arith.constant dense<0.000000e+00> : vector<2x32xf32>
    %59 = tpu.matmul %58, %5, %cst_20 {dimension_numbers = #tpu.dot_dimension_numbers<[1], [0], [0], [1], [0, 0, 1, 1], [], []>} : vector<2x32xbf16>, vector<32x32xbf16>, vector<2x32xf32> -> vector<2x32xf32>
    %60 = arith.addf %57, %59 : vector<2x32xf32>
    %61 = math.tanh %60 : vector<2x32xf32>
    %62 = vector.extract_strided_slice %12 {offsets = [0, 8, 0], sizes = [2, 1, 32], strides = [1, 1, 1]} : vector<2x16x32xf32> to vector<2x1x32xf32>
    %63 = vector.shape_cast %62 : vector<2x1x32xf32> to vector<2x32xf32>
    %64 = arith.truncf %61 : vector<2x32xf32> to vector<2x32xbf16>
    %cst_21 = arith.constant dense<0.000000e+00> : vector<2x32xf32>
    %65 = tpu.matmul %64, %5, %cst_21 {dimension_numbers = #tpu.dot_dimension_numbers<[1], [0], [0], [1], [0, 0, 1, 1], [], []>} : vector<2x32xbf16>, vector<32x32xbf16>, vector<2x32xf32> -> vector<2x32xf32>
    %66 = arith.addf %63, %65 : vector<2x32xf32>
    %67 = math.tanh %66 : vector<2x32xf32>
    %68 = vector.extract_strided_slice %12 {offsets = [0, 9, 0], sizes = [2, 1, 32], strides = [1, 1, 1]} : vector<2x16x32xf32> to vector<2x1x32xf32>
    %69 = vector.shape_cast %68 : vector<2x1x32xf32> to vector<2x32xf32>
    %70 = arith.truncf %67 : vector<2x32xf32> to vector<2x32xbf16>
    %cst_22 = arith.constant dense<0.000000e+00> : vector<2x32xf32>
    %71 = tpu.matmul %70, %5, %cst_22 {dimension_numbers = #tpu.dot_dimension_numbers<[1], [0], [0], [1], [0, 0, 1, 1], [], []>} : vector<2x32xbf16>, vector<32x32xbf16>, vector<2x32xf32> -> vector<2x32xf32>
    %72 = arith.addf %69, %71 : vector<2x32xf32>
    %73 = math.tanh %72 : vector<2x32xf32>
    %74 = vector.extract_strided_slice %12 {offsets = [0, 10, 0], sizes = [2, 1, 32], strides = [1, 1, 1]} : vector<2x16x32xf32> to vector<2x1x32xf32>
    %75 = vector.shape_cast %74 : vector<2x1x32xf32> to vector<2x32xf32>
    %76 = arith.truncf %73 : vector<2x32xf32> to vector<2x32xbf16>
    %cst_23 = arith.constant dense<0.000000e+00> : vector<2x32xf32>
    %77 = tpu.matmul %76, %5, %cst_23 {dimension_numbers = #tpu.dot_dimension_numbers<[1], [0], [0], [1], [0, 0, 1, 1], [], []>} : vector<2x32xbf16>, vector<32x32xbf16>, vector<2x32xf32> -> vector<2x32xf32>
    %78 = arith.addf %75, %77 : vector<2x32xf32>
    %79 = math.tanh %78 : vector<2x32xf32>
    %80 = vector.extract_strided_slice %12 {offsets = [0, 11, 0], sizes = [2, 1, 32], strides = [1, 1, 1]} : vector<2x16x32xf32> to vector<2x1x32xf32>
    %81 = vector.shape_cast %80 : vector<2x1x32xf32> to vector<2x32xf32>
    %82 = arith.truncf %79 : vector<2x32xf32> to vector<2x32xbf16>
    %cst_24 = arith.constant dense<0.000000e+00> : vector<2x32xf32>
    %83 = tpu.matmul %82, %5, %cst_24 {dimension_numbers = #tpu.dot_dimension_numbers<[1], [0], [0], [1], [0, 0, 1, 1], [], []>} : vector<2x32xbf16>, vector<32x32xbf16>, vector<2x32xf32> -> vector<2x32xf32>
    %84 = arith.addf %81, %83 : vector<2x32xf32>
    %85 = math.tanh %84 : vector<2x32xf32>
    %86 = vector.extract_strided_slice %12 {offsets = [0, 12, 0], sizes = [2, 1, 32], strides = [1, 1, 1]} : vector<2x16x32xf32> to vector<2x1x32xf32>
    %87 = vector.shape_cast %86 : vector<2x1x32xf32> to vector<2x32xf32>
    %88 = arith.truncf %85 : vector<2x32xf32> to vector<2x32xbf16>
    %cst_25 = arith.constant dense<0.000000e+00> : vector<2x32xf32>
    %89 = tpu.matmul %88, %5, %cst_25 {dimension_numbers = #tpu.dot_dimension_numbers<[1], [0], [0], [1], [0, 0, 1, 1], [], []>} : vector<2x32xbf16>, vector<32x32xbf16>, vector<2x32xf32> -> vector<2x32xf32>
    %90 = arith.addf %87, %89 : vector<2x32xf32>
    %91 = math.tanh %90 : vector<2x32xf32>
    %92 = vector.extract_strided_slice %12 {offsets = [0, 13, 0], sizes = [2, 1, 32], strides = [1, 1, 1]} : vector<2x16x32xf32> to vector<2x1x32xf32>
    %93 = vector.shape_cast %92 : vector<2x1x32xf32> to vector<2x32xf32>
    %94 = arith.truncf %91 : vector<2x32xf32> to vector<2x32xbf16>
    %cst_26 = arith.constant dense<0.000000e+00> : vector<2x32xf32>
    %95 = tpu.matmul %94, %5, %cst_26 {dimension_numbers = #tpu.dot_dimension_numbers<[1], [0], [0], [1], [0, 0, 1, 1], [], []>} : vector<2x32xbf16>, vector<32x32xbf16>, vector<2x32xf32> -> vector<2x32xf32>
    %96 = arith.addf %93, %95 : vector<2x32xf32>
    %97 = math.tanh %96 : vector<2x32xf32>
    %98 = vector.extract_strided_slice %12 {offsets = [0, 14, 0], sizes = [2, 1, 32], strides = [1, 1, 1]} : vector<2x16x32xf32> to vector<2x1x32xf32>
    %99 = vector.shape_cast %98 : vector<2x1x32xf32> to vector<2x32xf32>
    %100 = arith.truncf %97 : vector<2x32xf32> to vector<2x32xbf16>
    %cst_27 = arith.constant dense<0.000000e+00> : vector<2x32xf32>
    %101 = tpu.matmul %100, %5, %cst_27 {dimension_numbers = #tpu.dot_dimension_numbers<[1], [0], [0], [1], [0, 0, 1, 1], [], []>} : vector<2x32xbf16>, vector<32x32xbf16>, vector<2x32xf32> -> vector<2x32xf32>
    %102 = arith.addf %99, %101 : vector<2x32xf32>
    %103 = math.tanh %102 : vector<2x32xf32>
    %104 = vector.extract_strided_slice %12 {offsets = [0, 15, 0], sizes = [2, 1, 32], strides = [1, 1, 1]} : vector<2x16x32xf32> to vector<2x1x32xf32>
    %105 = vector.shape_cast %104 : vector<2x1x32xf32> to vector<2x32xf32>
    %106 = arith.truncf %103 : vector<2x32xf32> to vector<2x32xbf16>
    %cst_28 = arith.constant dense<0.000000e+00> : vector<2x32xf32>
    %107 = tpu.matmul %106, %5, %cst_28 {dimension_numbers = #tpu.dot_dimension_numbers<[1], [0], [0], [1], [0, 0, 1, 1], [], []>} : vector<2x32xbf16>, vector<32x32xbf16>, vector<2x32xf32> -> vector<2x32xf32>
    %108 = arith.addf %105, %107 : vector<2x32xf32>
    %109 = math.tanh %108 : vector<2x32xf32>
    %c0_29 = arith.constant 0 : index
    %c0_30 = arith.constant 0 : index
    %110 = vector.load %arg10[%c0_29, %c0_30] : memref<2x32xf32, #tpu.memory_space<vmem>>, vector<2x32xf32>
    tpu.vector_store %arg10[%c0_29, %c0_30], %109 {strides = array<i32>} : memref<2x32xf32, #tpu.memory_space<vmem>>, vector<2x32xf32>,
    %111 = vector.shape_cast %19 : vector<2x32xf32> to vector<2x1x32xf32>
    %112 = vector.shape_cast %25 : vector<2x32xf32> to vector<2x1x32xf32>
    %113 = vector.shape_cast %31 : vector<2x32xf32> to vector<2x1x32xf32>
    %114 = vector.shape_cast %37 : vector<2x32xf32> to vector<2x1x32xf32>
    %115 = vector.shape_cast %43 : vector<2x32xf32> to vector<2x1x32xf32>
    %116 = vector.shape_cast %49 : vector<2x32xf32> to vector<2x1x32xf32>
    %117 = vector.shape_cast %55 : vector<2x32xf32> to vector<2x1x32xf32>
    %118 = vector.shape_cast %61 : vector<2x32xf32> to vector<2x1x32xf32>
    %119 = vector.shape_cast %67 : vector<2x32xf32> to vector<2x1x32xf32>
    %120 = vector.shape_cast %73 : vector<2x32xf32> to vector<2x1x32xf32>
    %121 = vector.shape_cast %79 : vector<2x32xf32> to vector<2x1x32xf32>
    %122 = vector.shape_cast %85 : vector<2x32xf32> to vector<2x1x32xf32>
    %123 = vector.shape_cast %91 : vector<2x32xf32> to vector<2x1x32xf32>
    %124 = vector.shape_cast %97 : vector<2x32xf32> to vector<2x1x32xf32>
    %125 = vector.shape_cast %103 : vector<2x32xf32> to vector<2x1x32xf32>
    %126 = vector.shape_cast %109 : vector<2x32xf32> to vector<2x1x32xf32>
    %127 = tpu.concatenate %111, %112, %113, %114, %115, %116, %117, %118, %119, %120, %121, %122, %123, %124, %125, %126 in 1 : vector<2x1x32xf32>, vector<2x1x32xf32>, vector<2x1x32xf32>, vector<2x1x32xf32>, vector<2x1x32xf32>, vector<2x1x32xf32>, vector<2x1x32xf32>, vector<2x1x32xf32>, vector<2x1x32xf32>, vector<2x1x32xf32>, vector<2x1x32xf32>, vector<2x1x32xf32>, vector<2x1x32xf32>, vector<2x1x32xf32>, vector<2x1x32xf32>, vector<2x1x32xf32> -> vector<2x16x32xf32>
    %128 = vector.shape_cast %127 : vector<2x16x32xf32> to vector<32x32xf32>
    %129 = arith.truncf %128 : vector<32x32xf32> to vector<32x32xbf16>
    %cst_31 = arith.constant dense<0.000000e+00> : vector<32x128xf32>
    %130 = tpu.matmul %129, %6, %cst_31 {dimension_numbers = #tpu.dot_dimension_numbers<[1], [0], [0], [1], [0, 0, 1, 1], [], []>} : vector<32x32xbf16>, vector<32x128xbf16>, vector<32x128xf32> -> vector<32x128xf32>
    %131 = vector.shape_cast %130 : vector<32x128xf32> to vector<2x16x128xf32>
    %132 = arith.truncf %131 : vector<2x16x128xf32> to vector<2x16x128xbf16>
    %c0_32 = arith.constant 0 : index
    %c0_33 = arith.constant 0 : index
    %c0_34 = arith.constant 0 : index
    %133 = vector.load %arg8[%c0_32, %c0_33, %c0_34] : memref<2x16x128xbf16, #tpu.memory_space<vmem>>, vector<2x16x128xbf16>
    tpu.vector_store %arg8[%c0_32, %c0_33, %c0_34], %132 {strides = array<i32>} : memref<2x16x128xbf16, #tpu.memory_space<vmem>>, vector<2x16x128xbf16>,
    %c0_35 = arith.constant 0 : index
    %c0_36 = arith.constant 0 : index
    %c0_37 = arith.constant 0 : index
    %134 = vector.load %arg3[%c0_35, %c0_36, %c0_37] : memref<2x1x16xi32, #tpu.memory_space<vmem>>, vector<2x1x16xi32>
    %135 = vector.shape_cast %134 : vector<2x1x16xi32> to vector<2x16xi32>
    %c0_i32_38 = arith.constant 0 : i32
    %136 = vector.broadcast %c0_i32_38 : i32 to vector<2x16xi32>
    %137 = arith.cmpi sge, %135, %136 : vector<2x16xi32>
    %138 = arith.extui %137 : vector<2x16xi1> to vector<2x16xi32>
    %139 = arith.sitofp %138 : vector<2x16xi32> to vector<2x16xf32>
    %140 = tpu.iota {dimensions = array<i32: 2>} : vector<2x16x128xi32>
    %141 = vector.shape_cast %135 : vector<2x16xi32> to vector<2x16x1xi32>
    %142 = vector.broadcast %141 : vector<2x16x1xi32> to vector<2x16x128xi32>
    %143 = arith.cmpi eq, %140, %142 : vector<2x16x128xi32>
    %cst_39 = arith.constant 0.000000e+00 : f32
    %144 = vector.broadcast %cst_39 : f32 to vector<2x16x128xf32>
    %145 = arith.select %143, %131, %144 : vector<2x16x128xi1>, vector<2x16x128xf32>
    %cst_40 = arith.constant dense<0.000000e+00> : vector<2x16xf32>
    %146 = vector.multi_reduction <add>, %145, %cst_40 [2] : vector<2x16x128xf32> to vector<2x16xf32>
    %cst_41 = arith.constant dense<0xFF800000> : vector<2x16xf32>
    %147 = vector.multi_reduction <maximumf>, %131, %cst_41 [2] : vector<2x16x128xf32> to vector<2x16xf32>
    %148 = vector.shape_cast %147 : vector<2x16xf32> to vector<2x16x1xf32>
    %149 = vector.broadcast %148 : vector<2x16x1xf32> to vector<2x16x128xf32>
    %150 = arith.subf %131, %149 : vector<2x16x128xf32>
    %151 = math.exp %150 : vector<2x16x128xf32>
    %cst_42 = arith.constant dense<0.000000e+00> : vector<2x16xf32>
    %152 = vector.multi_reduction <add>, %151, %cst_42 [2] : vector<2x16x128xf32> to vector<2x16xf32>
    %153 = math.log %152 : vector<2x16xf32>
    %154 = arith.addf %153, %147 : vector<2x16xf32>
    %155 = arith.subf %154, %146 : vector<2x16xf32>
    %156 = arith.mulf %139, %155 : vector<2x16xf32>
    %157 = vector.shape_cast %156 : vector<2x16xf32> to vector<2x1x16xf32>
    %c0_43 = arith.constant 0 : index
    %c0_44 = arith.constant 0 : index
    %c0_45 = arith.constant 0 : index
    %158 = vector.load %arg9[%c0_43, %c0_44, %c0_45] : memref<2x1x16xf32, #tpu.memory_space<vmem>>, vector<2x1x16xf32>
    tpu.vector_store %arg9[%c0_43, %c0_44, %c0_45], %157 {strides = array<i32>} : memref<2x1x16xf32, #tpu.memory_space<vmem>>, vector<2x1x16xf32>,
    return
  }
  func.func @transform_0(%arg0: i32, %arg1: i32) -> (i32, i32, i32) {
    %c0_i32 = arith.constant 0 : i32
    %c0_i32_0 = arith.constant 0 : i32
    return %arg0, %arg1, %c0_i32 : i32, i32, i32
  }
  func.func @transform_1(%arg0: i32, %arg1: i32) -> (i32, i32, i32) {
    %c0_i32 = arith.constant 0 : i32
    %c0_i32_0 = arith.constant 0 : i32
    return %arg0, %arg1, %c0_i32 : i32, i32, i32
  }
  func.func @transform_2(%arg0: i32, %arg1: i32) -> (i32, i32) {
    %c0_i32 = arith.constant 0 : i32
    %c0_i32_0 = arith.constant 0 : i32
    %c0_i32_1 = arith.constant 0 : i32
    return %c0_i32, %c0_i32_0 : i32, i32
  }
  func.func @transform_3(%arg0: i32, %arg1: i32) -> (i32, i32) {
    %c0_i32 = arith.constant 0 : i32
    %c0_i32_0 = arith.constant 0 : i32
    %c0_i32_1 = arith.constant 0 : i32
    return %c0_i32, %c0_i32_0 : i32, i32
  }
  func.func @transform_4(%arg0: i32, %arg1: i32) -> (i32, i32) {
    %c0_i32 = arith.constant 0 : i32
    %c0_i32_0 = arith.constant 0 : i32
    %c0_i32_1 = arith.constant 0 : i32
    return %c0_i32, %c0_i32_0 : i32, i32
  }
  func.func @transform_5(%arg0: i32, %arg1: i32) -> (i32, i32) {
    %c0_i32 = arith.constant 0 : i32
    %c0_i32_0 = arith.constant 0 : i32
    %c0_i32_1 = arith.constant 0 : i32
    return %c0_i32, %c0_i32_0 : i32, i32
  }
  func.func @transform_6(%arg0: i32, %arg1: i32) -> (i32, i32, i32) {
    %c0_i32 = arith.constant 0 : i32
    %c0_i32_0 = arith.constant 0 : i32
    return %arg0, %arg1, %c0_i32 : i32, i32, i32
  }
  func.func @transform_7(%arg0: i32, %arg1: i32) -> (i32, i32, i32) {
    %c0_i32 = arith.constant 0 : i32
    %c0_i32_0 = arith.constant 0 : i32
    return %arg0, %arg1, %c0_i32 : i32, i32, i32
  }
}

</mosaic_0001>

<bundles_post_ra>
// kernel: tpu_custom_call.1
= control target key start
LH: loop header
LB: loop body
LE: loop exit
PB: predicated region body
PF: predicated region fallthrough
CT: control target
= control target key end

     0   :  { %13 = vsyncpa [#allocation4], 0  ;;  %s2818_s0 = inlined_call_operand.hbm [shape: bf16[2,16,32], index: 0, kind: input, shape index: {}]   ;;  %s2819_s1 = inlined_call_operand.vmem [shape: s32[2,1,16], index: 1, kind: input, shape index: {}]   ;;  %s2820_s2 = inlined_call_operand.hbm [shape: bf16[32,32], index: 2, kind: input, shape index: {}]   ;;  %s2821_s3 = inlined_call_operand.hbm [shape: bf16[32,32], index: 3, kind: input, shape index: {}]   ;;  %s2822_s4 = inlined_call_operand.hbm [shape: f32[1,32], index: 4, kind: input, shape index: {}]   ;;  %s2823_s5 = inlined_call_operand.vmem [shape: bf16[32,128], index: 5, kind: input, shape index: {}]   ;;  %s2824_s6 = inlined_call_operand.hbm [shape: bf16[2,16,128], index: 6, kind: output, shape index: {0}]   ;;  %s2825_s7 = inlined_call_operand.hbm [shape: f32[2,1,16], index: 7, kind: output, shape index: {1}]  }
   0x1   :  { %14 = vsyncpa [#allocation7], 0 }
   0x2   :  { %15 = vsyncpa [#allocation10], 0 }
   0x3   :  { %16 = vsyncpa [#allocation5], 0 }
   0x4   :  { %17 = vsyncpa [#allocation13], 0  ;;  %s2328_s24 = smov [#allocation6]   ;;  %s2329_s26 = smov [#allocation3]  }
   0x5   :  { %s37_s25 = sshll.u32 %s2328_s24, 4  ;;  %s23_s27 = sshll.u32 %s2329_s26, 4  ;;  %s38_s25 = int_to_ptr.vmem [resolvable:$true] %s37_s25  ;;  %s2382_s27 = int_to_ptr.vmem [resolvable:$true] %s23_s27 }
   0x6   :  { %s2186_s30 = scalar_lea.hbm %s2820_s2, 256 }
   0x7   :  { %p2187_p0 = scmp.ne.s32.totalorder %s2820_s2, %s2186_s30  ;;  %p2190_p1 = scmp.lt.u32.totalorder %s2186_s30, %s2820_s2 }
   0x9   :  { %p2192_p2 = pnand %p2190_p1, %p2187_p0 }
   0xb   :  { %2195 = shalt.err (!%p2192_p2)
}
   0xc   :  { %s2196_s12 = scalar_lea.vmem %s38_s25, 256  ;;  %p2201_p4 = scmp.lt.s32.totalorder %s38_s25, %s38_s25 }
   0xd   :  { %p2197_p3 = scmp.ne.s32.totalorder %s38_s25, %s2196_s12  ;;  %p2202_p5 = scmp.lt.s32.totalorder %s2196_s12, %s2196_s12 }
   0xf   :  { %p2203_p6 = por %p2202_p5, %p2201_p4 }
  0x11   :  { %p2204_p7 = pnand %p2203_p6, %p2197_p3 }
  0x13   :  { %2207 = shalt.err (!%p2204_p7)
}
  0x14   :  { %s2330_s13 = smov 64   ;;  %s2331_s14 = smov 4  }
  0x15   :  { %43 = dma.hbm_to_vmem [thread:$0]  %s2820_s2, 256, %s38_s25, [#allocation7], %s2330_s13, %s2330_s13, %s2331_s14  }
  0x16   :  { %s2208_s19 = scalar_lea.hbm %s2818_s0, 256 }
  0x17   :  { %p2209_p8 = scmp.ne.s32.totalorder %s2818_s0, %s2208_s19  ;;  %p2212_p9 = scmp.lt.u32.totalorder %s2208_s19, %s2818_s0 }
  0x19   :  { %p2214_p10 = pnand %p2212_p9, %p2209_p8 }
  0x1b   :  { %2217 = shalt.err (!%p2214_p10)
}
  0x1c   :  { %s2218_s24 = scalar_lea.vmem %s2382_s27, 256  ;;  %p2223_p12 = scmp.lt.s32.totalorder %s2382_s27, %s2382_s27 }
  0x1d   :  { %p2219_p11 = scmp.ne.s32.totalorder %s2382_s27, %s2218_s24  ;;  %p2224_p13 = scmp.lt.s32.totalorder %s2218_s24, %s2218_s24 }
  0x1f   :  { %p2225_p0 = por %p2224_p13, %p2223_p12 }
  0x21   :  { %p2226_p1 = pnand %p2225_p0, %p2219_p11 }
  0x23   :  { %2229 = shalt.err (!%p2226_p1)
}
  0x24   :  { %29 = dma.hbm_to_vmem [thread:$0]  %s2818_s0, 256, %s2382_s27, [#allocation4], %s2330_s13, %s2330_s13, %s2331_s14  }
  0x25   :  { %s2332_s26 = smov [#allocation8]   ;;  %s2333_s29 = smov [#allocation9]  }
  0x26   :  { %s49_s28 = sshll.u32 %s2332_s26, 4  ;;  %s62_s30 = sshll.u32 %s2333_s29, 4  ;;  %s50_s28 = int_to_ptr.vmem [resolvable:$true] %s49_s28  ;;  %s63_s30 = int_to_ptr.vmem [resolvable:$true] %s62_s30 }
  0x27   :  { %s2230_s10 = scalar_lea.hbm %s2821_s3, 256 }
  0x28   :  { %p2231_p2 = scmp.ne.s32.totalorder %s2821_s3, %s2230_s10  ;;  %p2234_p3 = scmp.lt.u32.totalorder %s2230_s10, %s2821_s3 }
  0x2a   :  { %p2236_p4 = pnand %p2234_p3, %p2231_p2 }
  0x2c   :  { %2239 = shalt.err (!%p2236_p4)
}
  0x2d   :  { %s2240_s0 = scalar_lea.vmem %s50_s28, 256  ;;  %p2245_p6 = scmp.lt.s32.totalorder %s50_s28, %s50_s28 }
  0x2e   :  { %p2241_p5 = scmp.ne.s32.totalorder %s50_s28, %s2240_s0  ;;  %p2246_p7 = scmp.lt.s32.totalorder %s2240_s0, %s2240_s0 }
  0x30   :  { %p2247_p8 = por %p2246_p7, %p2245_p6 }
  0x32   :  { %p2248_p9 = pnand %p2247_p8, %p2241_p5 }
  0x34   :  { %2251 = shalt.err (!%p2248_p9)
}
  0x35   :  { %55 = dma.hbm_to_vmem [thread:$0]  %s2821_s3, 256, %s50_s28, [#allocation7], %s2330_s13, %s2330_s13, %s2331_s14  }
  0x36   :  { %s2252_s20 = scalar_lea.hbm %s2822_s4, 16 }
  0x37   :  { %p2253_p10 = scmp.ne.s32.totalorder %s2822_s4, %s2252_s20  ;;  %p2256_p11 = scmp.lt.u32.totalorder %s2252_s20, %s2822_s4 }
  0x39   :  { %p2258_p12 = pnand %p2256_p11, %p2253_p10 }
  0x3b   :  { %2261 = shalt.err (!%p2258_p12)
}
  0x3c   :  { %s2262_s2 = scalar_lea.vmem %s63_s30, 16  ;;  %s2266_s25 = scalar_lea.vmem %s63_s30, 32 }
  0x3d   :  { %p2263_p13 = scmp.ne.s32.totalorder %s63_s30, %s2262_s2  ;;  %p2267_p0 = scmp.lt.s32.totalorder %s63_s30, %s63_s30 }
  0x3e   :  { %p2268_p1 = scmp.lt.s32.totalorder %s2266_s25, %s2262_s2 }
  0x40   :  { %p2269_p2 = por %p2268_p1, %p2267_p0 }
  0x42   :  { %p2270_p3 = pnand %p2269_p2, %p2263_p13 }
  0x44   :  { %2273 = shalt.err (!%p2270_p3)
}
  0x45   :  { %65 = dma.hbm_to_vmem [thread:$0]  %s2822_s4, 16, %s63_s30, [#allocation10]  }
  0x46   :  { %2318 = dma.done.wait [#allocation4], 256  }
  0x47   :  { %2319 = vsyncadd [#allocation4], 4294967040 }
  0x48   :  { %2320 = dma.done.wait [#allocation7], 512  }
  0x49   :  { %2321 = vsyncadd [#allocation7], 4294966784 }
  0x4a   :  { %2322 = dma.done.wait [#allocation10], 16  }
  0x4b   :  { %2323 = vsyncadd [#allocation10], 4294967280  ;;  %vm85_vm0 = vcmask 254976   ;;  %v2334_v0 = vmov 0.0   ;;  %vm2335_vm1 = vmmov 0   ;;  %v2098_v1 = vld [vmem:[#allocation6] sm:$0xff]  }
  0x4c   :  { %1946 = vmatprep.subr.bf16.mxu1 %v2334_v0  ;;  %1950 = vmatprep.mubr.msk.bf16.mxu1 %vm2335_vm1, %v2334_v0  ;;  %86 = vst.msk [vmem:[#allocation2] sm:$0x3] %vm85_vm0, %v2334_v0  ;;  %v2450_v2 = vld [vmem:[#allocation8] sm:$0xff]   ;;  %v2100_v3 = vld [vmem:[#allocation6 + $0x8] sm:$0xff]   ;;  %v2453_v4 = vld [vmem:[#allocation8 + $0x8] sm:$0xff]   ;;  %vm132_vm2 = vcmask 261120  }
  0x4d   :  { %1938 = vmatprep.subr.bf16.mxu0 %v2098_v1  ;;  %1947 = vmatpush3.bf16.msra.mxu1 %v2450_v2  ;;  %v2102_v5 = vld [vmem:[#allocation3] sm:$0xff]   ;;  %v2103_v8 = vld [vmem:[#allocation3 + $0x8] sm:$0xff]   ;;  %v1832_v9 = vld [vmem:[#allocation9] ss:$0 sm:$0xff]  ;;  %vm260_vm3 = vcmask 1041409   ;;  %vm1186_vm4 = vcmask 1040384  }
  0x4e   :  { %1939 = vmatpush3.bf16.msra.mxu0 %v2098_v1  ;;  %1948 = vmatprep.subr.bf16.mxu1 %v2334_v0  ;;  %vm1189_vm5 = vcmask 1041408   ;;  %vm1192_vm6 = vcmask 1042432   ;;  %vm1195_vm7 = vcmask 1043456   ;;  %vm1198_vm8 = vcmask 1044480  }
  0x4f   :  { %1940 = vmatprep.subr.bf16.mxu0 %v2100_v3  ;;  %1942 = vmatprep.mubr.msk.bf16.mxu0 %vm132_vm2, %v2102_v5  ;;  %vm1201_vm9 = vcmask 1045504   ;;  %vm1204_vm10 = vcmask 1046528   ;;  %vm1182_vm11 = vcmask 261127   ;;  %vm1184_vm12 = vcmask 253952  }
  0x51   :  { %1949 = vmatpush3.bf16.msra.mxu1 %v2453_v4 }
  0x52   :  { %1941 = vmatpush3.bf16.msra.mxu0 %v2100_v3  ;;  %1962 = vmatprep.subr.bf16.mxu1 %v2334_v0 }
  0x53   :  { %v188_v6 = vld [vmem:[#allocation2] sm:$0x3]  ;;  %1954 = vmatprep.subr.bf16.mxu0 %v2334_v0 }
  0x54   :  { %v189_v7 = vpack.c.bf16 %v188_v6, %v188_v6 }
  0x55   :  { %1943 = vmatmul.mubr.msk.bf16.vlgmr.msra.gmra.mrb[0].mxu0 %vm132_vm2, %v2103_v8 }
  0x56   :  { %1951 = vmatmul.mubr.msk.bf16.vlgmr.msra.gmra.mrb[0].mxu1 %vm132_vm2, %v189_v7  ;;  %1955 = vmatpush3.bf16.msra.mxu0 %v2450_v2 }
  0x57   :  { %1958 = vmatprep.mubr.msk.bf16.mxu0 %vm2335_vm1, %v2334_v0  ;;  %1956 = vmatprep.subr.bf16.mxu0 %v2334_v0 }
  0x58   :  { %1963 = vmatpush3.bf16.msra.mxu1 %v2450_v2  ;;  %1966 = vmatprep.mubr.msk.bf16.mxu1 %vm2335_vm1, %v2334_v0 }
  0x59   :  { %1964 = vmatprep.subr.bf16.mxu1 %v2334_v0 }
  0x5a   :  { %1957 = vmatpush3.bf16.msra.mxu0 %v2453_v4 }
  0x5b   :  { %1970 = vmatprep.subr.bf16.mxu0 %v2334_v0 }
  0x5c   :  { %1965 = vmatpush3.bf16.msra.mxu1 %v2453_v4 }
  0x5d   :  { %1978 = vmatprep.subr.bf16.mxu1 %v2334_v0 }
 0x128   :  { %v1944_v11 = vpop.f32.mrb[0].mxu0 }
 0x129   :  { %v239_v10 = vpop.f32.mrb[0].mxu1  ;;  %v2474_v13 = vadd.f32 %v1944_v11, %v1832_v9  ;;  %v173_v15 = vpop.f32.mrb[1].mxu0 }
 0x12a   :  { %v246_v12 = vrot.slane %v239_v10, 1  ;;  %v1952_v14 = vpop.f32.mrb[1].mxu1  ;;  %v2476_v16 = vadd.f32 %v1832_v9, %v173_v15  ;;  %v1945_v18 = vpop.f32.mrb[2].mxu0 }
 0x12b   :  { %v242_v17 = vpop.f32.mrb[2].mxu1  ;;  %v2478_v19 = vadd.f32 %v1945_v18, %v1832_v9  ;;  %v176_v21 = vpop.f32.mrb[3].mxu0 }
 0x12c   :  { %v1953_v20 = vpop.f32.mrb[3].mxu1  ;;  %v250_v22 = vadd.f32 %v246_v12, %v2474_v13  ;;  %v2481_v23 = vadd.f32 %v1832_v9, %v176_v21  ;;  %v249_v24 = vadd.f32 %v239_v10, %v2476_v16 }
 0x12e   :  { %2106 = vtanh.f32 %v250_v22 }
 0x12f   :  { %2108 = vtanh.f32 %v249_v24 }
 0x138   :  { %v2107_v25 = vpop.eup %2106 }
 0x139   :  { %v2109_v26 = vpop.eup %2108  ;;  %v254_v27 = vpack.c.bf16 %v2107_v25, %v2107_v25 }
 0x13a   :  { %v253_v28 = vpack.c.bf16 %v2109_v26, %v2109_v26 }
 0x13b   :  { %v258_v29 = vunpack.c.l.b16 %v254_v27 }
 0x13c   :  { %v257_v30 = vunpack.c.l.b16 %v253_v28 }
 0x13d   :  { %v259_v31 = vrot.slane %v258_v29, 7 }
 0x13f   :  { %v261_v32 = vsel %vm260_vm3, %v259_v31, %v257_v30 }
 0x140   :  { %v262_v33 = vpack.c.b16 %v261_v32, %v261_v32 }
 0x142   :  { %1959 = vmatmul.mubr.msk.bf16.vlgmr.msra.gmra.mrb[4].mxu0 %vm132_vm2, %v262_v33 }
 0x143   :  { %1971 = vmatpush3.bf16.msra.mxu0 %v2450_v2  ;;  %1974 = vmatprep.mubr.msk.bf16.mxu0 %vm2335_vm1, %v2334_v0 }
 0x144   :  { %1972 = vmatprep.subr.bf16.mxu0 %v2334_v0 }
 0x147   :  { %1973 = vmatpush3.bf16.msra.mxu0 %v2453_v4 }
 0x148   :  { %1986 = vmatprep.subr.bf16.mxu0 %v2334_v0 }
 0x215   :  { %v300_v34 = vpop.f32.mrb[4].mxu0 }
 0x216   :  { %v307_v35 = vrot.slane %v300_v34, 7  ;;  %v311_v36 = vadd.f32 %v300_v34, %v2474_v13  ;;  %v1960_v37 = vpop.f32.mrb[5].mxu0 }
 0x217   :  { %v303_v38 = vpop.f32.mrb[6].mxu0 }
 0x218   :  { %v310_v39 = vadd.f32 %v307_v35, %v2476_v16  ;;  %2110 = vtanh.f32 %v311_v36  ;;  %v1961_v40 = vpop.f32.mrb[7].mxu0 }
 0x21a   :  { %2112 = vtanh.f32 %v310_v39 }
 0x222   :  { %v2111_v41 = vpop.eup %2110 }
 0x223   :  { %v315_v44 = vpack.c.bf16 %v2111_v41, %v2111_v41  ;;  %v1188_v63 = vsel %vm1186_vm4, %v2107_v25, %v2111_v41 }
 0x224   :  { %v2113_v42 = vpop.eup %2112 }
 0x225   :  { %v314_v43 = vpack.c.bf16 %v2113_v42, %v2113_v42  ;;  %v319_v46 = vunpack.c.l.b16 %v315_v44  ;;  %v1187_v59 = vsel %vm1186_vm4, %v2109_v26, %v2113_v42 }
 0x227   :  { %v318_v45 = vunpack.c.l.b16 %v314_v43 }
 0x229   :  { %v320_v47 = vrot.slane %v318_v45, 1 }
 0x22b   :  { %v321_v48 = vsel %vm260_vm3, %v319_v46, %v320_v47 }
 0x22c   :  { %v322_v49 = vpack.c.b16 %v321_v48, %v321_v48 }
 0x22e   :  { %1967 = vmatmul.mubr.msk.bf16.vlgmr.msra.gmra.mrb[4].mxu1 %vm132_vm2, %v322_v49 }
 0x22f   :  { %1979 = vmatpush3.bf16.msra.mxu1 %v2450_v2  ;;  %1982 = vmatprep.mubr.msk.bf16.mxu1 %vm2335_vm1, %v2334_v0 }
 0x230   :  { %1980 = vmatprep.subr.bf16.mxu1 %v2334_v0 }
 0x233   :  { %1981 = vmatpush3.bf16.msra.mxu1 %v2453_v4 }
 0x234   :  { %1994 = vmatprep.subr.bf16.mxu1 %v2334_v0 }
 0x301   :  { %v360_v50 = vpop.f32.mrb[4].mxu1 }
 0x302   :  { %v367_v51 = vrot.slane %v360_v50, 6  ;;  %v368_v52 = vrot.slane %v360_v50, 7  ;;  %v1968_v53 = vpop.f32.mrb[5].mxu1 }
 0x303   :  { %v363_v54 = vpop.f32.mrb[6].mxu1 }
 0x304   :  { %v371_v55 = vadd.f32 %v367_v51, %v2476_v16  ;;  %v372_v56 = vadd.f32 %v368_v52, %v2474_v13  ;;  %v1969_v57 = vpop.f32.mrb[7].mxu1 }
 0x306   :  { %2114 = vtanh.f32 %v371_v55 }
 0x307   :  { %2116 = vtanh.f32 %v372_v56 }
 0x310   :  { %v2115_v58 = vpop.eup %2114 }
 0x311   :  { %v2117_v60 = vpop.eup %2116  ;;  %v375_v61 = vpack.c.bf16 %v2115_v58, %v2115_v58  ;;  %v1190_v62 = vsel %vm1189_vm5, %v1187_v59, %v2115_v58 }
 0x312   :  { %v376_v1 = vpack.c.bf16 %v2117_v60, %v2117_v60  ;;  %v1191_v3 = vsel %vm1189_vm5, %v1188_v63, %v2117_v60 }
 0x313   :  { %v379_v5 = vunpack.c.l.b16 %v375_v61 }
 0x314   :  { %v380_v6 = vunpack.c.l.b16 %v376_v1 }
 0x315   :  { %v381_v7 = vrot.slane %v379_v5, 2 }
 0x316   :  { %v382_v8 = vrot.slane %v380_v6, 1 }
 0x318   :  { %v383_v9 = vsel %vm260_vm3, %v382_v8, %v381_v7 }
 0x319   :  { %v384_v10 = vpack.c.b16 %v383_v9, %v383_v9 }
 0x31b   :  { %1975 = vmatmul.mubr.msk.bf16.vlgmr.msra.gmra.mrb[8].mxu0 %vm132_vm2, %v384_v10 }
 0x31c   :  { %1987 = vmatpush3.bf16.msra.mxu0 %v2450_v2  ;;  %1990 = vmatprep.mubr.msk.bf16.mxu0 %vm2335_vm1, %v2334_v0 }
 0x31d   :  { %1988 = vmatprep.subr.bf16.mxu0 %v2334_v0 }
 0x320   :  { %1989 = vmatpush3.bf16.msra.mxu0 %v2453_v4 }
 0x321   :  { %2002 = vmatprep.subr.bf16.mxu0 %v2334_v0 }
 0x3ee   :  { %v422_v11 = vpop.f32.mrb[8].mxu0 }
 0x3ef   :  { %v429_v12 = vrot.slane %v422_v11, 5  ;;  %v430_v14 = vrot.slane %v422_v11, 6  ;;  %v1976_v15 = vpop.f32.mrb[9].mxu0 }
 0x3f0   :  { %v425_v17 = vpop.f32.mrb[10].mxu0 }
 0x3f1   :  { %v433_v18 = vadd.f32 %v429_v12, %v2476_v16  ;;  %v434_v20 = vadd.f32 %v430_v14, %v2474_v13  ;;  %v1977_v21 = vpop.f32.mrb[11].mxu0 }
 0x3f3   :  { %2118 = vtanh.f32 %v433_v18 }
 0x3f4   :  { %2120 = vtanh.f32 %v434_v20 }
 0x3fd   :  { %v2119_v22 = vpop.eup %2118 }
 0x3fe   :  { %v2121_v24 = vpop.eup %2120  ;;  %v437_v25 = vpack.c.bf16 %v2119_v22, %v2119_v22  ;;  %v1193_v26 = vsel %vm1192_vm6, %v1190_v62, %v2119_v22 }
 0x3ff   :  { %v438_v27 = vpack.c.bf16 %v2121_v24, %v2121_v24  ;;  %v1194_v28 = vsel %vm1192_vm6, %v1191_v3, %v2121_v24 }
 0x400   :  { %v441_v29 = vunpack.c.l.b16 %v437_v25 }
 0x401   :  { %v442_v30 = vunpack.c.l.b16 %v438_v27 }
 0x402   :  { %v443_v31 = vrot.slane %v441_v29, 3 }
 0x403   :  { %v444_v32 = vrot.slane %v442_v30, 2 }
 0x405   :  { %v445_v33 = vsel %vm260_vm3, %v444_v32, %v443_v31 }
 0x406   :  { %v446_v34 = vpack.c.b16 %v445_v33, %v445_v33 }
 0x408   :  { %1983 = vmatmul.mubr.msk.bf16.vlgmr.msra.gmra.mrb[8].mxu1 %vm132_vm2, %v446_v34 }
 0x409   :  { %1995 = vmatpush3.bf16.msra.mxu1 %v2450_v2  ;;  %1998 = vmatprep.mubr.msk.bf16.mxu1 %vm2335_vm1, %v2334_v0 }
 0x40a   :  { %1996 = vmatprep.subr.bf16.mxu1 %v2334_v0 }
 0x40d   :  { %1997 = vmatpush3.bf16.msra.mxu1 %v2453_v4 }
 0x40e   :  { %2010 = vmatprep.subr.bf16.mxu1 %v2334_v0 }
 0x4db   :  { %v484_v35 = vpop.f32.mrb[8].mxu1 }
 0x4dc   :  { %v491_v36 = vrot.slane %v484_v35, 4  ;;  %v492_v37 = vrot.slane %v484_v35, 5  ;;  %v1984_v38 = vpop.f32.mrb[9].mxu1 }
 0x4dd   :  { %v487_v39 = vpop.f32.mrb[10].mxu1 }
 0x4de   :  { %v495_v40 = vadd.f32 %v491_v36, %v2476_v16  ;;  %v496_v41 = vadd.f32 %v492_v37, %v2474_v13  ;;  %v1985_v42 = vpop.f32.mrb[11].mxu1 }
 0x4e0   :  { %2122 = vtanh.f32 %v495_v40 }
 0x4e1   :  { %2124 = vtanh.f32 %v496_v41 }
 0x4ea   :  { %v2123_v43 = vpop.eup %2122 }
 0x4eb   :  { %v2125_v44 = vpop.eup %2124  ;;  %v499_v45 = vpack.c.bf16 %v2123_v43, %v2123_v43  ;;  %v1196_v46 = vsel %vm1195_vm7, %v1193_v26, %v2123_v43 }
 0x4ec   :  { %v500_v47 = vpack.c.bf16 %v2125_v44, %v2125_v44  ;;  %v1197_v48 = vsel %vm1195_vm7, %v1194_v28, %v2125_v44 }
 0x4ed   :  { %v503_v49 = vunpack.c.l.b16 %v499_v45 }
 0x4ee   :  { %v504_v50 = vunpack.c.l.b16 %v500_v47 }
 0x4ef   :  { %v505_v51 = vrot.slane %v503_v49, 4 }
 0x4f0   :  { %v506_v52 = vrot.slane %v504_v50, 3 }
 0x4f2   :  { %v507_v53 = vsel %vm260_vm3, %v506_v52, %v505_v51 }
 0x4f3   :  { %v508_v54 = vpack.c.b16 %v507_v53, %v507_v53 }
 0x4f5   :  { %1991 = vmatmul.mubr.msk.bf16.vlgmr.msra.gmra.mrb[12].mxu0 %vm132_vm2, %v508_v54 }
 0x4f6   :  { %2003 = vmatpush3.bf16.msra.mxu0 %v2450_v2  ;;  %2006 = vmatprep.mubr.msk.bf16.mxu0 %vm2335_vm1, %v2334_v0 }
 0x4f7   :  { %2004 = vmatprep.subr.bf16.mxu0 %v2334_v0 }
 0x4fa   :  { %2005 = vmatpush3.bf16.msra.mxu0 %v2453_v4 }
 0x4fb   :  { %2018 = vmatprep.subr.bf16.mxu0 %v2334_v0 }
 0x5c8   :  { %v546_v55 = vpop.f32.mrb[12].mxu0 }
 0x5c9   :  { %v553_v56 = vrot.slane %v546_v55, 3  ;;  %v554_v57 = vrot.slane %v546_v55, 4  ;;  %v1992_v58 = vpop.f32.mrb[13].mxu0 }
 0x5ca   :  { %v549_v59 = vpop.f32.mrb[14].mxu0 }
 0x5cb   :  { %v557_v60 = vadd.f32 %v553_v56, %v2476_v16  ;;  %v558_v61 = vadd.f32 %v554_v57, %v2474_v13  ;;  %v1993_v62 = vpop.f32.mrb[15].mxu0 }
 0x5cd   :  { %2126 = vtanh.f32 %v557_v60 }
 0x5ce   :  { %2128 = vtanh.f32 %v558_v61 }
 0x5d7   :  { %v2127_v63 = vpop.eup %2126 }
 0x5d8   :  { %v2129_v1 = vpop.eup %2128  ;;  %v561_v3 = vpack.c.bf16 %v2127_v63, %v2127_v63  ;;  %v1199_v5 = vsel %vm1198_vm8, %v1196_v46, %v2127_v63 }
 0x5d9   :  { %v562_v6 = vpack.c.bf16 %v2129_v1, %v2129_v1  ;;  %v1200_v7 = vsel %vm1198_vm8, %v1197_v48, %v2129_v1 }
 0x5da   :  { %v565_v8 = vunpack.c.l.b16 %v561_v3 }
 0x5db   :  { %v566_v9 = vunpack.c.l.b16 %v562_v6 }
 0x5dc   :  { %v567_v10 = vrot.slane %v565_v8, 5 }
 0x5dd   :  { %v568_v11 = vrot.slane %v566_v9, 4 }
 0x5df   :  { %v569_v12 = vsel %vm260_vm3, %v568_v11, %v567_v10 }
 0x5e0   :  { %v570_v14 = vpack.c.b16 %v569_v12, %v569_v12 }
 0x5e2   :  { %1999 = vmatmul.mubr.msk.bf16.vlgmr.msra.gmra.mrb[12].mxu1 %vm132_vm2, %v570_v14 }
 0x5e3   :  { %2011 = vmatpush3.bf16.msra.mxu1 %v2450_v2  ;;  %2014 = vmatprep.mubr.msk.bf16.mxu1 %vm2335_vm1, %v2334_v0 }
 0x5e4   :  { %2012 = vmatprep.subr.bf16.mxu1 %v2334_v0 }
 0x5e7   :  { %2013 = vmatpush3.bf16.msra.mxu1 %v2453_v4 }
 0x5e8   :  { %2026 = vmatprep.subr.bf16.mxu1 %v2334_v0 }
 0x6b5   :  { %v608_v15 = vpop.f32.mrb[12].mxu1 }
 0x6b6   :  { %v615_v17 = vrot.slane %v608_v15, 2  ;;  %v616_v18 = vrot.slane %v608_v15, 3  ;;  %v2000_v20 = vpop.f32.mrb[13].mxu1 }
 0x6b7   :  { %v611_v21 = vpop.f32.mrb[14].mxu1 }
 0x6b8   :  { %v619_v22 = vadd.f32 %v615_v17, %v2476_v16  ;;  %v620_v24 = vadd.f32 %v616_v18, %v2474_v13  ;;  %v2001_v25 = vpop.f32.mrb[15].mxu1 }
 0x6ba   :  { %2130 = vtanh.f32 %v619_v22 }
 0x6bb   :  { %2132 = vtanh.f32 %v620_v24 }
 0x6c4   :  { %v2131_v26 = vpop.eup %2130 }
 0x6c5   :  { %v2133_v27 = vpop.eup %2132  ;;  %v623_v28 = vpack.c.bf16 %v2131_v26, %v2131_v26  ;;  %v1202_v29 = vsel %vm1201_vm9, %v1199_v5, %v2131_v26 }
 0x6c6   :  { %v624_v30 = vpack.c.bf16 %v2133_v27, %v2133_v27  ;;  %v1203_v31 = vsel %vm1201_vm9, %v1200_v7, %v2133_v27 }
 0x6c7   :  { %v627_v32 = vunpack.c.l.b16 %v623_v28 }
 0x6c8   :  { %v628_v33 = vunpack.c.l.b16 %v624_v30 }
 0x6c9   :  { %v629_v34 = vrot.slane %v627_v32, 6 }
 0x6ca   :  { %v630_v35 = vrot.slane %v628_v33, 5 }
 0x6cc   :  { %v631_v36 = vsel %vm260_vm3, %v630_v35, %v629_v34 }
 0x6cd   :  { %v632_v37 = vpack.c.b16 %v631_v36, %v631_v36 }
 0x6cf   :  { %2007 = vmatmul.mubr.msk.bf16.vlgmr.msra.gmra.mrb[16].mxu0 %vm132_vm2, %v632_v37 }
 0x6d0   :  { %2019 = vmatpush3.bf16.msra.mxu0 %v2450_v2  ;;  %2022 = vmatprep.mubr.msk.bf16.mxu0 %vm2335_vm1, %v2334_v0 }
 0x6d1   :  { %2020 = vmatprep.subr.bf16.mxu0 %v2334_v0 }
 0x6d4   :  { %2021 = vmatpush3.bf16.msra.mxu0 %v2453_v4 }
 0x6d5   :  { %2034 = vmatprep.subr.bf16.mxu0 %v2334_v0 }
 0x7a2   :  { %v670_v38 = vpop.f32.mrb[16].mxu0 }
 0x7a3   :  { %v677_v39 = vrot.slane %v670_v38, 1  ;;  %v678_v40 = vrot.slane %v670_v38, 2  ;;  %v2008_v41 = vpop.f32.mrb[17].mxu0 }
 0x7a4   :  { %v673_v42 = vpop.f32.mrb[18].mxu0 }
 0x7a5   :  { %v681_v43 = vadd.f32 %v677_v39, %v2476_v16  ;;  %v682_v44 = vadd.f32 %v678_v40, %v2474_v13  ;;  %v2009_v45 = vpop.f32.mrb[19].mxu0 }
 0x7a7   :  { %2134 = vtanh.f32 %v681_v43 }
 0x7a8   :  { %2136 = vtanh.f32 %v682_v44 }
 0x7b1   :  { %v2135_v46 = vpop.eup %2134 }
 0x7b2   :  { %v2137_v47 = vpop.eup %2136  ;;  %v685_v48 = vpack.c.bf16 %v2135_v46, %v2135_v46  ;;  %v2567_v49 = vsel %vm1204_vm10, %v1202_v29, %v2135_v46 }
 0x7b3   :  { %v686_v50 = vpack.c.bf16 %v2137_v47, %v2137_v47  ;;  %v2570_v51 = vsel %vm1204_vm10, %v1203_v31, %v2137_v47 }
 0x7b4   :  { %v689_v52 = vunpack.c.l.b16 %v685_v48 }
 0x7b5   :  { %v690_v53 = vunpack.c.l.b16 %v686_v50 }
 0x7b6   :  { %v691_v54 = vrot.slane %v689_v52, 7 }
 0x7b7   :  { %v692_v16 = vrot.slane %v690_v53, 6 }
 0x7b9   :  { %v693_v13 = vsel %vm260_vm3, %v692_v16, %v691_v54 }
 0x7ba   :  { %v694_v55 = vpack.c.b16 %v693_v13, %v693_v13 }
 0x7bc   :  { %2015 = vmatmul.mubr.msk.bf16.vlgmr.msra.gmra.mrb[16].mxu1 %vm132_vm2, %v694_v55 }
 0x7bd   :  { %2027 = vmatpush3.bf16.msra.mxu1 %v2450_v2  ;;  %2030 = vmatprep.mubr.msk.bf16.mxu1 %vm2335_vm1, %v2334_v0 }
 0x7be   :  { %2028 = vmatprep.subr.bf16.mxu1 %v2334_v0 }
 0x7c1   :  { %2029 = vmatpush3.bf16.msra.mxu1 %v2453_v4 }
 0x7c2   :  { %2042 = vmatprep.subr.bf16.mxu1 %v2334_v0 }
 0x88f   :  { %v732_v56 = vpop.f32.mrb[16].mxu1 }
 0x890   :  { %v739_v57 = vrot.slane %v732_v56, 1  ;;  %v742_v58 = vadd.f32 %v732_v56, %v2481_v23  ;;  %v2016_v59 = vpop.f32.mrb[17].mxu1 }
 0x891   :  { %v735_v60 = vpop.f32.mrb[18].mxu1 }
 0x892   :  { %v743_v61 = vadd.f32 %v739_v57, %v2478_v19  ;;  %2138 = vtanh.f32 %v742_v58  ;;  %v2017_v62 = vpop.f32.mrb[19].mxu1 }
 0x894   :  { %2140 = vtanh.f32 %v743_v61 }
 0x89c   :  { %v2139_v63 = vpop.eup %2138 }
 0x89d   :  { %v746_v3 = vpack.c.bf16 %v2139_v63, %v2139_v63 }
 0x89e   :  { %v2141_v1 = vpop.eup %2140 }
 0x89f   :  { %v747_v5 = vpack.c.bf16 %v2141_v1, %v2141_v1  ;;  %v750_v7 = vunpack.c.l.b16 %v746_v3 }
 0x8a1   :  { %v751_v6 = vunpack.c.l.b16 %v747_v5 }
 0x8a3   :  { %v752_v8 = vrot.slane %v751_v6, 7 }
 0x8a5   :  { %v753_v9 = vsel %vm260_vm3, %v752_v8, %v750_v7 }
 0x8a6   :  { %v754_v10 = vpack.c.b16 %v753_v9, %v753_v9 }
 0x8a8   :  { %2023 = vmatmul.mubr.msk.bf16.vlgmr.msra.gmra.mrb[20].mxu0 %vm132_vm2, %v754_v10 }
 0x8a9   :  { %2035 = vmatpush3.bf16.msra.mxu0 %v2450_v2  ;;  %2038 = vmatprep.mubr.msk.bf16.mxu0 %vm2335_vm1, %v2334_v0 }
 0x8aa   :  { %2036 = vmatprep.subr.bf16.mxu0 %v2334_v0 }
 0x8ad   :  { %2037 = vmatpush3.bf16.msra.mxu0 %v2453_v4 }
 0x8ae   :  { %2050 = vmatprep.subr.bf16.mxu0 %v2334_v0 }
 0x97b   :  { %v792_v11 = vpop.f32.mrb[20].mxu0 }
 0x97c   :  { %v799_v12 = vrot.slane %v792_v11, 7  ;;  %v803_v14 = vadd.f32 %v792_v11, %v2478_v19  ;;  %v2024_v15 = vpop.f32.mrb[21].mxu0 }
 0x97d   :  { %v795_v17 = vpop.f32.mrb[22].mxu0 }
 0x97e   :  { %v802_v18 = vadd.f32 %v799_v12, %v2481_v23  ;;  %2142 = vtanh.f32 %v803_v14  ;;  %v2025_v20 = vpop.f32.mrb[23].mxu0 }
 0x980   :  { %2144 = vtanh.f32 %v802_v18 }
 0x988   :  { %v2143_v21 = vpop.eup %2142 }
 0x989   :  { %v807_v25 = vpack.c.bf16 %v2143_v21, %v2143_v21  ;;  %v1208_v44 = vsel %vm1186_vm4, %v2141_v1, %v2143_v21 }
 0x98a   :  { %v2145_v22 = vpop.eup %2144 }
 0x98b   :  { %v806_v24 = vpack.c.bf16 %v2145_v22, %v2145_v22  ;;  %v811_v27 = vunpack.c.l.b16 %v807_v25  ;;  %v1207_v40 = vsel %vm1186_vm4, %v2139_v63, %v2145_v22 }
 0x98d   :  { %v810_v26 = vunpack.c.l.b16 %v806_v24 }
 0x98f   :  { %v812_v28 = vrot.slane %v810_v26, 1 }
 0x991   :  { %v813_v29 = vsel %vm260_vm3, %v811_v27, %v812_v28 }
 0x992   :  { %v814_v30 = vpack.c.b16 %v813_v29, %v813_v29 }
 0x994   :  { %2031 = vmatmul.mubr.msk.bf16.vlgmr.msra.gmra.mrb[20].mxu1 %vm132_vm2, %v814_v30 }
 0x995   :  { %2043 = vmatpush3.bf16.msra.mxu1 %v2450_v2  ;;  %2046 = vmatprep.mubr.msk.bf16.mxu1 %vm2335_vm1, %v2334_v0 }
 0x996   :  { %2044 = vmatprep.subr.bf16.mxu1 %v2334_v0 }
 0x999   :  { %2045 = vmatpush3.bf16.msra.mxu1 %v2453_v4 }
 0x99a   :  { %2058 = vmatprep.subr.bf16.mxu1 %v2334_v0 }
 0xa67   :  { %v852_v31 = vpop.f32.mrb[20].mxu1 }
 0xa68   :  { %v859_v32 = vrot.slane %v852_v31, 6  ;;  %v860_v33 = vrot.slane %v852_v31, 7  ;;  %v2032_v34 = vpop.f32.mrb[21].mxu1 }
 0xa69   :  { %v855_v35 = vpop.f32.mrb[22].mxu1 }
 0xa6a   :  { %v863_v36 = vadd.f32 %v859_v32, %v2481_v23  ;;  %v864_v37 = vadd.f32 %v860_v33, %v2478_v19  ;;  %v2033_v38 = vpop.f32.mrb[23].mxu1 }
 0xa6c   :  { %2146 = vtanh.f32 %v863_v36 }
 0xa6d   :  { %2148 = vtanh.f32 %v864_v37 }
 0xa76   :  { %v2147_v39 = vpop.eup %2146 }
 0xa77   :  { %v2149_v41 = vpop.eup %2148  ;;  %v867_v42 = vpack.c.bf16 %v2147_v39, %v2147_v39  ;;  %v1209_v43 = vsel %vm1189_vm5, %v1207_v40, %v2147_v39 }
 0xa78   :  { %v868_v45 = vpack.c.bf16 %v2149_v41, %v2149_v41  ;;  %v1210_v46 = vsel %vm1189_vm5, %v1208_v44, %v2149_v41 }
 0xa79   :  { %v871_v47 = vunpack.c.l.b16 %v867_v42 }
 0xa7a   :  { %v872_v48 = vunpack.c.l.b16 %v868_v45 }
 0xa7b   :  { %v873_v50 = vrot.slane %v871_v47, 2 }
 0xa7c   :  { %v874_v52 = vrot.slane %v872_v48, 1 }
 0xa7e   :  { %v875_v53 = vsel %vm260_vm3, %v874_v52, %v873_v50 }
 0xa7f   :  { %v876_v54 = vpack.c.b16 %v875_v53, %v875_v53 }
 0xa81   :  { %2039 = vmatmul.mubr.msk.bf16.vlgmr.msra.gmra.mrb[24].mxu0 %vm132_vm2, %v876_v54 }
 0xa82   :  { %2051 = vmatpush3.bf16.msra.mxu0 %v2450_v2  ;;  %2054 = vmatprep.mubr.msk.bf16.mxu0 %vm2335_vm1, %v2334_v0 }
 0xa83   :  { %2052 = vmatprep.subr.bf16.mxu0 %v2334_v0 }
 0xa86   :  { %2053 = vmatpush3.bf16.msra.mxu0 %v2453_v4 }
 0xa87   :  { %2066 = vmatprep.subr.bf16.mxu0 %v2334_v0 }
 0xb54   :  { %v914_v16 = vpop.f32.mrb[24].mxu0 }
 0xb55   :  { %v921_v13 = vrot.slane %v914_v16, 5  ;;  %v922_v55 = vrot.slane %v914_v16, 6  ;;  %v2040_v56 = vpop.f32.mrb[25].mxu0 }
 0xb56   :  { %v917_v57 = vpop.f32.mrb[26].mxu0 }
 0xb57   :  { %v925_v58 = vadd.f32 %v921_v13, %v2481_v23  ;;  %v926_v59 = vadd.f32 %v922_v55, %v2478_v19  ;;  %v2041_v60 = vpop.f32.mrb[27].mxu0 }
 0xb59   :  { %2150 = vtanh.f32 %v925_v58 }
 0xb5a   :  { %2152 = vtanh.f32 %v926_v59 }
 0xb63   :  { %v2151_v61 = vpop.eup %2150 }
 0xb64   :  { %v2153_v62 = vpop.eup %2152  ;;  %v929_v63 = vpack.c.bf16 %v2151_v61, %v2151_v61  ;;  %v1211_v1 = vsel %vm1192_vm6, %v1209_v43, %v2151_v61 }
 0xb65   :  { %v930_v3 = vpack.c.bf16 %v2153_v62, %v2153_v62  ;;  %v1212_v5 = vsel %vm1192_vm6, %v1210_v46, %v2153_v62 }
 0xb66   :  { %v933_v6 = vunpack.c.l.b16 %v929_v63 }
 0xb67   :  { %v934_v7 = vunpack.c.l.b16 %v930_v3 }
 0xb68   :  { %v935_v8 = vrot.slane %v933_v6, 3 }
 0xb69   :  { %v936_v9 = vrot.slane %v934_v7, 2 }
 0xb6b   :  { %v937_v10 = vsel %vm260_vm3, %v936_v9, %v935_v8 }
 0xb6c   :  { %v938_v11 = vpack.c.b16 %v937_v10, %v937_v10 }
 0xb6e   :  { %2047 = vmatmul.mubr.msk.bf16.vlgmr.msra.gmra.mrb[24].mxu1 %vm132_vm2, %v938_v11 }
 0xb6f   :  { %2059 = vmatpush3.bf16.msra.mxu1 %v2450_v2  ;;  %2062 = vmatprep.mubr.msk.bf16.mxu1 %vm2335_vm1, %v2334_v0 }
 0xb70   :  { %2060 = vmatprep.subr.bf16.mxu1 %v2334_v0 }
 0xb73   :  { %2061 = vmatpush3.bf16.msra.mxu1 %v2453_v4 }
 0xc41   :  { %v976_v12 = vpop.f32.mrb[24].mxu1 }
 0xc42   :  { %v983_v14 = vrot.slane %v976_v12, 4  ;;  %v984_v15 = vrot.slane %v976_v12, 5  ;;  %v2048_v17 = vpop.f32.mrb[25].mxu1 }
 0xc43   :  { %v979_v18 = vpop.f32.mrb[26].mxu1 }
 0xc44   :  { %v987_v20 = vadd.f32 %v983_v14, %v2481_v23  ;;  %v988_v21 = vadd.f32 %v984_v15, %v2478_v19  ;;  %v2049_v22 = vpop.f32.mrb[27].mxu1  ;;  %v2104_v14 = vld [vmem:[%s2823_s5] sm:$0xff]   ;;  %v2105_v15 = vld [vmem:[%s2823_s5 + $0x8] sm:$0xff]  }
 0xc45   :  { %2074 = vmatprep.subr.bf16.mxu1 %v2104_v14 }
 0xc46   :  { %2154 = vtanh.f32 %v987_v20 }
 0xc47   :  { %2156 = vtanh.f32 %v988_v21 }
 0xc50   :  { %v2155_v24 = vpop.eup %2154 }
 0xc51   :  { %v2157_v25 = vpop.eup %2156  ;;  %v991_v26 = vpack.c.bf16 %v2155_v24, %v2155_v24  ;;  %v1213_v27 = vsel %vm1195_vm7, %v1211_v1, %v2155_v24 }
 0xc52   :  { %v992_v28 = vpack.c.bf16 %v2157_v25, %v2157_v25  ;;  %v1214_v29 = vsel %vm1195_vm7, %v1212_v5, %v2157_v25 }
 0xc53   :  { %v995_v30 = vunpack.c.l.b16 %v991_v26 }
 0xc54   :  { %v996_v31 = vunpack.c.l.b16 %v992_v28 }
 0xc55   :  { %v997_v32 = vrot.slane %v995_v30, 4 }
 0xc56   :  { %v998_v33 = vrot.slane %v996_v31, 3 }
 0xc58   :  { %v999_v34 = vsel %vm260_vm3, %v998_v33, %v997_v32 }
 0xc59   :  { %v1000_v35 = vpack.c.b16 %v999_v34, %v999_v34 }
 0xc5b   :  { %2055 = vmatmul.mubr.msk.bf16.vlgmr.msra.gmra.mrb[28].mxu0 %vm132_vm2, %v1000_v35 }
 0xc5c   :  { %2067 = vmatpush3.bf16.msra.mxu0 %v2450_v2  ;;  %2070 = vmatprep.mubr.msk.bf16.mxu0 %vm2335_vm1, %v2334_v0 }
 0xc5d   :  { %2068 = vmatprep.subr.bf16.mxu0 %v2334_v0 }
 0xc60   :  { %2069 = vmatpush3.bf16.msra.mxu0 %v2453_v4 }
 0xd2e   :  { %v1038_v36 = vpop.f32.mrb[28].mxu0 }
 0xd2f   :  { %v1045_v37 = vrot.slane %v1038_v36, 3  ;;  %v1046_v38 = vrot.slane %v1038_v36, 4  ;;  %v2056_v39 = vpop.f32.mrb[29].mxu0 }
 0xd30   :  { %v1041_v40 = vpop.f32.mrb[30].mxu0  ;;  %v2670_v39 = vld [vmem:[%s2819_s1] sm:$0x1] }
 0xd31   :  { %v1049_v41 = vadd.f32 %v1045_v37, %v2481_v23  ;;  %v1050_v42 = vadd.f32 %v1046_v38, %v2478_v19  ;;  %v2057_v43 = vpop.f32.mrb[31].mxu0 }
 0xd33   :  { %2158 = vtanh.f32 %v1049_v41  ;;  %v2677_v41 = vld [vmem:[%s2819_s1 + $0x1] sm:$0x1]  ;;  %s2338_s1 = smov [#allocation11]  }
 0xd34   :  { %2160 = vtanh.f32 %v1050_v42  ;;  %s1802_s11 = sshll.u32 %s2338_s1, 4  ;;  %s1803_s11 = int_to_ptr.vmem [resolvable:$true] %s1802_s11 }
 0xd35   :  { %s2274_s12 = scalar_lea.vmem %s1803_s11, 256  ;;  %p2279_p5 = scmp.lt.s32.totalorder %s1803_s11, %s1803_s11 }
 0xd36   :  { %p2275_p4 = scmp.ne.s32.totalorder %s1803_s11, %s2274_s12  ;;  %p2280_p6 = scmp.lt.s32.totalorder %s2274_s12, %s2274_s12 }
 0xd38   :  { %p2281_p7 = por %p2280_p6, %p2279_p5 }
 0xd3a   :  { %p2282_p8 = pnand %p2281_p7, %p2275_p4 }
 0xd3d   :  { %v2159_v2 = vpop.eup %2158 }
 0xd3e   :  { %v2161_v44 = vpop.eup %2160  ;;  %v1053_v45 = vpack.c.bf16 %v2159_v2, %v2159_v2  ;;  %v1215_v46 = vsel %vm1198_vm8, %v1213_v27, %v2159_v2 }
 0xd3f   :  { %v1054_v47 = vpack.c.bf16 %v2161_v44, %v2161_v44  ;;  %v1216_v4 = vsel %vm1198_vm8, %v1214_v29, %v2161_v44 }
 0xd40   :  { %v1057_v48 = vunpack.c.l.b16 %v1053_v45 }
 0xd41   :  { %v1058_v50 = vunpack.c.l.b16 %v1054_v47 }
 0xd42   :  { %v1059_v52 = vrot.slane %v1057_v48, 5 }
 0xd43   :  { %v1060_v53 = vrot.slane %v1058_v50, 4 }
 0xd45   :  { %v1061_v54 = vsel %vm260_vm3, %v1060_v53, %v1059_v52 }
 0xd46   :  { %v1062_v16 = vpack.c.b16 %v1061_v54, %v1061_v54 }
 0xd48   :  { %2063 = vmatmul.mubr.msk.bf16.vlgmr.msra.gmra.mrb[28].mxu1 %vm132_vm2, %v1062_v16 }
 0xd49   :  { %2075 = vmatpush3.bf16.msra.mxu1 %v2104_v14 }
 0xd4a   :  { %2076 = vmatprep.subr.bf16.mxu1 %v2105_v15 }
 0xd4d   :  { %2077 = vmatpush3.bf16.msra.mxu1 %v2105_v15 }
 0xe1b   :  { %v1100_v13 = vpop.f32.mrb[28].mxu1 }
 0xe1c   :  { %v1107_v55 = vrot.slane %v1100_v13, 2  ;;  %v1108_v56 = vrot.slane %v1100_v13, 3  ;;  %v2064_v57 = vpop.f32.mrb[29].mxu1 }
 0xe1d   :  { %v1103_v58 = vpop.f32.mrb[30].mxu1 }
 0xe1e   :  { %v1111_v59 = vadd.f32 %v1107_v55, %v2481_v23  ;;  %v1112_v60 = vadd.f32 %v1108_v56, %v2478_v19  ;;  %v2065_v61 = vpop.f32.mrb[31].mxu1 }
 0xe20   :  { %2162 = vtanh.f32 %v1111_v59 }
 0xe21   :  { %2164 = vtanh.f32 %v1112_v60 }
 0xe2a   :  { %v2163_v62 = vpop.eup %2162 }
 0xe2b   :  { %v2165_v63 = vpop.eup %2164  ;;  %v1115_v1 = vpack.c.bf16 %v2163_v62, %v2163_v62  ;;  %v1217_v3 = vsel %vm1201_vm9, %v1215_v46, %v2163_v62 }
 0xe2c   :  { %v1116_v5 = vpack.c.bf16 %v2165_v63, %v2165_v63  ;;  %v1218_v6 = vsel %vm1201_vm9, %v1216_v4, %v2165_v63 }
 0xe2d   :  { %v1119_v7 = vunpack.c.l.b16 %v1115_v1 }
 0xe2e   :  { %v1120_v8 = vunpack.c.l.b16 %v1116_v5  ;;  %v2336_v5 = vmov 0  }
 0xe2f   :  { %v1121_v9 = vrot.slane %v1119_v7, 6  ;;  %2096 = vset.pattern.permute.xlu0 %v2336_v5  ;;  %2097 = vset.pattern.permute.xlu1 %v2336_v5 }
 0xe30   :  { %v1122_v10 = vrot.slane %v1120_v8, 5 }
 0xe32   :  { %v1123_v11 = vsel %vm260_vm3, %v1122_v10, %v1121_v9  ;;  %v2337_v10 = vmov 1966171168  }
 0xe33   :  { %v1124_v12 = vpack.c.b16 %v1123_v11, %v1123_v11  ;;  %v1539_v11 = vunpack.c.l.s4 %v2337_v10 }
 0xe35   :  { %2071 = vmatmul.mubr.msk.bf16.vlgmr.msra.gmra.mrb[32].mxu0 %vm132_vm2, %v1124_v12  ;;  %v1540_v15 = vunpack.c.0.s8 %v1539_v11 }
 0xf08   :  { %v1162_v17 = vpop.f32.mrb[32].mxu0 }
 0xf09   :  { %v1169_v18 = vrot.slane %v1162_v17, 1  ;;  %v1170_v20 = vrot.slane %v1162_v17, 2  ;;  %v2072_v21 = vpop.f32.mrb[33].mxu0 }
 0xf0a   :  { %v1165_v22 = vpop.f32.mrb[34].mxu0 }
 0xf0b   :  { %v1173_v24 = vadd.f32 %v1169_v18, %v2481_v23  ;;  %v1174_v25 = vadd.f32 %v1170_v20, %v2478_v19  ;;  %v2073_v26 = vpop.f32.mrb[35].mxu0 }
 0xf0d   :  { %2166 = vtanh.f32 %v1173_v24 }
 0xf0e   :  { %2168 = vtanh.f32 %v1174_v25 }
 0xf17   :  { %v2167_v27 = vpop.eup %2166 }
 0xf18   :  { %v2169_v28 = vpop.eup %2168  ;;  %1183 = vst.msk [vmem:[#allocation2 - $0x7] sm:$0x80] %vm1182_vm11, %v2167_v27  ;;  %v1219_v29 = vsel %vm1204_vm10, %v1217_v3, %v2167_v27 }
 0xf19   :  { %v1179_v30 = vrot.slane %v2169_v28, 7  ;;  %v1221_v31 = vpack.c.bf16 %v1219_v29, %v2567_v49  ;;  %v1220_v32 = vsel %vm1204_vm10, %v1218_v6, %v2169_v28  ;;  %v1318_v49 = vlaneseq }
 0xf1a   :  { %v1222_v33 = vpack.c.bf16 %v1220_v32, %v2570_v51 }
 0xf1b   :  { %1185 = vst.msk [vmem:[#allocation2 + $0x1] sm:$0x1] %vm1184_vm12, %v1179_v30  ;;  %2078 = vmatprep.mubr.msk.bf16.mxu1 %vm132_vm2, %v1221_v31  ;;  %v2662_v38 = vshrl.u32 %v1318_v49, 7  ;;  %v2690_v56 = vand.u32 127, %v1318_v49 }
 0xf1c   :  { %2079 = vmatmul.mubr.msk.bf16.vlgmr.msra.gmra.mrb[32].mxu1 %vm132_vm2, %v1222_v33 }
 0xf1d   :  { %v2665_v51 = vsub.s32 0, %v2662_v38  ;;  %v2697_v20 = vsub.s32 1, %v2662_v38  ;;  %v2700_v21 = vsub.s32 2, %v2662_v38  ;;  %v2703_v24 = vsub.s32 3, %v2662_v38 }
 0xf1e   :  { %v2706_v25 = vsub.s32 4, %v2662_v38  ;;  %v2709_v26 = vsub.s32 5, %v2662_v38  ;;  %v2712_v30 = vsub.s32 6, %v2662_v38  ;;  %v2715_v31 = vsub.s32 7, %v2662_v38 }
 0xf1f   :  { %v1323_v40 = vrot.slane %v2670_v39, %v2665_v51  ;;  %v1334_v42 = vrot.slane %v2677_v41, %v2665_v51  ;;  %v2718_v32 = vsub.s32 %v1540_v15, %v2662_v38 }
 0xfef   :  { %v2080_v19 = vpop.f32.mrb[32].mxu1 }
 0xff0   :  { %1362 = vmax.xlane.f32.xlu1 %v2080_v19  ;;  %v1275_v23 = vpop.f32.mrb[33].mxu1 }
 0xff1   :  { %1358 = vmax.xlane.f32.xlu0 %v1275_v23  ;;  %v2081_v34 = vpop.f32.mrb[34].mxu1 }
 0xff2   :  { %v1278_v35 = vpop.f32.mrb[35].mxu1  ;;  %v1879_v36 = vpack.c.bf16 %v2081_v34, %v2080_v19 }
 0xff3   :  { %v1874_v37 = vpack.c.bf16 %v1278_v35, %v1275_v23 }
 0xff4   :  { %1364 = vmax.xlane.f32.xlu1 %v2081_v34  ;;  %1881 = vst [vmem:[#allocation11 + $0x8] sm:$0xff] %v1879_v36  }
 0xff5   :  { %1875 = vst [vmem:[#allocation11] sm:$0xff] %v1874_v37   ;;  %1360 = vmax.xlane.f32.xlu0 %v1278_v35 }
0x1005   :  { %1329 = vbcast.lane.b32.xlu1 %v1323_v40, 264 }
0x1009   :  { %1336 = vbcast.lane.b32.xlu1 %v1334_v42, 256 }
0x100b   :  { %1325 = vbcast.lane.b32.xlu0 %v1323_v40, 256 }
0x100d   :  { %1340 = vbcast.lane.b32.xlu1 %v1334_v42, 264 }
0x107d   :  { %v2681_v43 = vpop.xlane.xlu1 %1362 }
0x107e   :  { %v1368_v2 = vsub.f32 %v2080_v19, %v2681_v43  ;;  %v1359_v44 = vpop.xlane.xlu0 %1358 }
0x107f   :  { %v1366_v45 = vsub.f32 %v1275_v23, %v1359_v44 }
0x1080   :  { %v1374_v4 = vmul.f32 1.442695, %v1368_v2 }
0x1081   :  { %v1370_v46 = vmul.f32 1.442695, %v1366_v45  ;;  %v2684_v47 = vpop.xlane.xlu1 %1364 }
0x1082   :  { %v2686_v48 = vpop.xlane.xlu0 %1360  ;;  %v1369_v50 = vsub.f32 %v2081_v34, %v2684_v47 }
0x1083   :  { %2170 = vpow2.f32 %v1370_v46  ;;  %v1367_v52 = vsub.f32 %v1278_v35, %v2686_v48 }
0x1084   :  { %2172 = vpow2.f32 %v1374_v4  ;;  %v1376_v54 = vmul.f32 1.442695, %v1369_v50 }
0x1085   :  { %v1372_v53 = vmul.f32 1.442695, %v1367_v52  ;;  %v1330_v16 = vpop.permute.xlu1 %1329 }
0x1086   :  { %vm1343_vm13 = vcmp.eq.s32.totalorder %v2690_v56, %v1330_v16  ;;  %v1326_v59 = vpop.permute.xlu0 %1325 }
0x1087   :  { %2174 = vpow2.f32 %v1372_v53  ;;  %v1347_v62 = vsel %vm1343_vm13, %v1278_v35, 0.0  ;;  %vm1342_vm14 = vcmp.eq.s32.totalorder %v2690_v56, %v1326_v59 }
0x1088   :  { %2176 = vpow2.f32 %v1376_v54  ;;  %v1346_v63 = vsel %vm1342_vm14, %v1275_v23, 0.0 }
0x1089   :  { %v1337_v55 = vpop.permute.xlu1 %1336 }
0x108a   :  { %vm1344_vm0 = vcmp.eq.s32.totalorder %v2690_v56, %v1337_v55 }
0x108b   :  { %v1348_v3 = vsel %vm1344_vm0, %v2080_v19, 0.0 }
0x108d   :  { %v2171_v13 = vpop.eup %2170  ;;  %v1341_v60 = vpop.permute.xlu1 %1340 }
0x108e   :  { %1378 = vadd.xlane.f32.xlu0 %v2171_v13  ;;  %v2173_v57 = vpop.eup %2172  ;;  %vm1345_vm15 = vcmp.eq.s32.totalorder %v2690_v56, %v1341_v60 }
0x108f   :  { %v1349_v1 = vsel %vm1345_vm15, %v2081_v34, 0.0 }
0x1091   :  { %v2175_v58 = vpop.eup %2174 }
0x1092   :  { %1382 = vadd.xlane.f32.xlu0 %v2173_v57  ;;  %1380 = vadd.xlane.f32.xlu1 %v2175_v58  ;;  %v2177_v61 = vpop.eup %2176 }
0x1096   :  { %1384 = vadd.xlane.f32.xlu0 %v2177_v61  ;;  %1352 = vadd.xlane.f32.xlu1 %v1347_v62 }
0x109a   :  { %1350 = vadd.xlane.f32.xlu0 %v1346_v63  ;;  %1356 = vadd.xlane.f32.xlu1 %v1349_v1 }
0x109e   :  { %1354 = vadd.xlane.f32.xlu0 %v1348_v3 }
0x111b   :  { %v1379_v6 = vpop.xlane.xlu0 %1378 }
0x111c   :  { %2178 = vlog2.f32 %v1379_v6 }
0x111f   :  { %v1381_v7 = vpop.xlane.xlu1 %1380  ;;  %v1383_v8 = vpop.xlane.xlu0 %1382 }
0x1120   :  { %2180 = vlog2.f32 %v1381_v7 }
0x1121   :  { %2182 = vlog2.f32 %v1383_v8 }
0x1123   :  { %v1385_v9 = vpop.xlane.xlu0 %1384  ;;  %v1353_v19 = vpop.xlane.xlu1 %1352 }
0x1124   :  { %2184 = vlog2.f32 %v1385_v9 }
0x1126   :  { %v2179_v12 = vpop.eup %2178 }
0x1127   :  { %v1387_v14 = vmul.f32 0.6931472, %v2179_v12  ;;  %v1351_v18 = vpop.xlane.xlu0 %1350  ;;  %v1357_v57 = vpop.xlane.xlu1 %1356 }
0x1129   :  { %v1394_v17 = vadd.f32 %v1387_v14, %v1359_v44 }
0x112a   :  { %v2181_v22 = vpop.eup %2180 }
0x112b   :  { %v2183_v27 = vpop.eup %2182  ;;  %v1389_v28 = vmul.f32 0.6931472, %v2181_v22  ;;  %v1398_v29 = vsub.f32 %v1394_v17, %v1351_v18  ;;  %v1355_v46 = vpop.xlane.xlu0 %1354 }
0x112c   :  { %v1391_v33 = vmul.f32 0.6931472, %v2183_v27 }
0x112d   :  { %v1395_v23 = vadd.f32 %v1389_v28, %v2686_v48  ;;  %v1409_v34 = vrot.slane %v1398_v29, %v2665_v51  ;;  %v1413_v35 = vrot.slane %v1398_v29, %v2697_v20  ;;  %v1417_v36 = vrot.slane %v1398_v29, %v2700_v21 }
0x112e   :  { %v2185_v37 = vpop.eup %2184  ;;  %v1396_v49 = vadd.f32 %v1391_v33, %v2681_v43  ;;  %v1421_v40 = vrot.slane %v1398_v29, %v2703_v24  ;;  %v1425_v42 = vrot.slane %v1398_v29, %v2706_v25  ;;  %v1429_v2 = vrot.slane %v1398_v29, %v2709_v26 }
0x112f   :  { %v1393_v44 = vmul.f32 0.6931472, %v2185_v37  ;;  %v1399_v45 = vsub.f32 %v1395_v23, %v1353_v19  ;;  %v1433_v4 = vrot.slane %v1398_v29, %v2712_v30  ;;  %v1437_v48 = vrot.slane %v1398_v29, %v2715_v31 }
0x1130   :  { %v1400_v50 = vsub.f32 %v1396_v49, %v1355_v46  ;;  %v1534_v52 = vcombine.low %v1409_v34, %v1413_v35  ;;  %v1535_v53 = vcombine.low %v1417_v36, %v1421_v40  ;;  %v1536_v54 = vcombine.low %v1425_v42, %v1429_v2 }
0x1131   :  { %v1397_v16 = vadd.f32 %v1393_v44, %v2684_v47  ;;  %v1537_v43 = vcombine.low %v1433_v4, %v1437_v48  ;;  %v1441_v13 = vrot.slane %v1399_v45, %v2665_v51  ;;  %v1445_v55 = vrot.slane %v1399_v45, %v2697_v20 }
0x1132   :  { %v1544_v58 = vrot.slane %v1534_v52, %v2718_v32  ;;  %v1551_v59 = vrot.slane %v1535_v53, %v2718_v32  ;;  %v1558_v60 = vrot.slane %v1536_v54, %v2718_v32  ;;  %v1473_v61 = vrot.slane %v1400_v50, %v2665_v51 }
0x1133   :  { %v1401_v62 = vsub.f32 %v1397_v16, %v1357_v57  ;;  %v1565_v63 = vrot.slane %v1537_v43, %v2718_v32  ;;  %v1477_v1 = vrot.slane %v1400_v50, %v2697_v20  ;;  %v1481_v47 = vrot.slane %v1400_v50, %v2700_v21 }
0x1134   :  { %v1566_v3 = vcombine.low %v1544_v58, %v1551_v59  ;;  %v1485_v5 = vrot.slane %v1400_v50, %v2703_v24  ;;  %v1489_v6 = vrot.slane %v1400_v50, %v2706_v25  ;;  %v1493_v7 = vrot.slane %v1400_v50, %v2709_v26 }
0x1135   :  { %v1567_v8 = vcombine.low %v1558_v60, %v1565_v63  ;;  %v1497_v9 = vrot.slane %v1400_v50, %v2712_v30  ;;  %v1501_v10 = vrot.slane %v1400_v50, %v2715_v31  ;;  %v1632_v11 = vcombine.low %v1473_v61, %v1477_v1 }
0x1136   :  { %v1574_v12 = vrot.slane %v1566_v3, %v2718_v32  ;;  %v1633_v14 = vcombine.low %v1481_v47, %v1485_v5  ;;  %v1634_v15 = vcombine.low %v1489_v6, %v1493_v7  ;;  %v1449_v17 = vrot.slane %v1399_v45, %v2700_v21 }
0x1137   :  { %v1581_v18 = vrot.slane %v1567_v8, %v2718_v32  ;;  %v1635_v22 = vcombine.low %v1497_v9, %v1501_v10  ;;  %v1642_v27 = vrot.slane %v1632_v11, %v2718_v32  ;;  %v1453_v28 = vrot.slane %v1399_v45, %v2703_v24 }
0x1138   :  { %v1649_v29 = vrot.slane %v1633_v14, %v2718_v32  ;;  %v1656_v33 = vrot.slane %v1634_v15, %v2718_v32  ;;  %v1457_v19 = vrot.slane %v1399_v45, %v2706_v25  ;;  %v1461_v23 = vrot.slane %v1399_v45, %v2709_v26 }
0x1139   :  { %v1582_v34 = vcombine.low %v1574_v12, %v1581_v18  ;;  %v1663_v35 = vrot.slane %v1635_v22, %v2718_v32  ;;  %v1465_v36 = vrot.slane %v1399_v45, %v2712_v30  ;;  %v1469_v37 = vrot.slane %v1399_v45, %v2715_v31 }
0x113a   :  { %v1664_v49 = vcombine.low %v1642_v27, %v1649_v29  ;;  %v1583_v40 = vcombine.low %v1441_v13, %v1445_v55  ;;  %v1584_v42 = vcombine.low %v1449_v17, %v1453_v28  ;;  %v1585_v2 = vcombine.low %v1457_v19, %v1461_v23 }
0x113b   :  { %1731 = vperm.xlu0 %2096, %v1582_v34   ;;  %v1665_v44 = vcombine.low %v1656_v33, %v1663_v35  ;;  %v1586_v46 = vcombine.low %v1465_v36, %v1469_v37  ;;  %v1505_v4 = vrot.slane %v1401_v62, %v2665_v51  ;;  %v1509_v48 = vrot.slane %v1401_v62, %v2697_v20 }
0x113c   :  { %v1672_v50 = vrot.slane %v1664_v49, %v2718_v32  ;;  %v1593_v52 = vrot.slane %v1583_v40, %v2718_v32  ;;  %v1600_v53 = vrot.slane %v1584_v42, %v2718_v32  ;;  %v1607_v54 = vrot.slane %v1585_v2, %v2718_v32 }
0x113d   :  { %v1679_v45 = vrot.slane %v1665_v44, %v2718_v32  ;;  %v1614_v16 = vrot.slane %v1586_v46, %v2718_v32  ;;  %v1513_v43 = vrot.slane %v1401_v62, %v2700_v21  ;;  %v1517_v13 = vrot.slane %v1401_v62, %v2703_v24 }
0x113e   :  { %v1615_v55 = vcombine.low %v1593_v52, %v1600_v53  ;;  %v1521_v51 = vrot.slane %v1401_v62, %v2706_v25  ;;  %v1525_v20 = vrot.slane %v1401_v62, %v2709_v26  ;;  %v1529_v57 = vrot.slane %v1401_v62, %v2712_v30 }
0x113f   :  { %v1680_v58 = vcombine.low %v1672_v50, %v1679_v45  ;;  %v1616_v59 = vcombine.low %v1607_v54, %v1614_v16  ;;  %v1533_v60 = vrot.slane %v1401_v62, %v2715_v31  ;;  %v1681_v61 = vcombine.low %v1505_v4, %v1509_v48 }
0x1140   :  { %v1623_v63 = vrot.slane %v1615_v55, %v2718_v32  ;;  %v1682_v1 = vcombine.low %v1513_v43, %v1517_v13  ;;  %v1683_v47 = vcombine.low %v1521_v51, %v1525_v20 }
0x1141   :  { %1737 = vperm.xlu1 %2097, %v1680_v58   ;;  %v1630_v21 = vrot.slane %v1616_v59, %v2718_v32  ;;  %v1684_v24 = vcombine.low %v1529_v57, %v1533_v60  ;;  %v1691_v3 = vrot.slane %v1681_v61, %v2718_v32 }
0x1142   :  { %v1698_v25 = vrot.slane %v1682_v1, %v2718_v32  ;;  %v1705_v26 = vrot.slane %v1683_v47, %v2718_v32 }
0x1143   :  { %v1631_v30 = vcombine.low %v1623_v63, %v1630_v21  ;;  %v1712_v5 = vrot.slane %v1684_v24, %v2718_v32 }
0x1144   :  { %v1713_v6 = vcombine.low %v1691_v3, %v1698_v25 }
0x1145   :  { %1734 = vperm.xlu1 %2097, %v1631_v30   ;;  %v1714_v31 = vcombine.low %v1705_v26, %v1712_v5 }
0x1146   :  { %v1721_v62 = vrot.slane %v1713_v6, %v2718_v32 }
0x1147   :  { %v1728_v7 = vrot.slane %v1714_v31, %v2718_v32 }
0x1149   :  { %v1729_v8 = vcombine.low %v1721_v62, %v1728_v7 }
0x114b   :  { %1740 = vperm.xlu1 %2097, %v1729_v8  }
0x114c   :  { %2285 = shalt.err (!%p2282_p8)
}
0x114d   :  { %s2286_s0 = scalar_lea.hbm %s2824_s6, 256 }
0x114e   :  { %p2287_p9 = scmp.ne.s32.totalorder %s2824_s6, %s2286_s0  ;;  %p2290_p10 = scmp.lt.u32.totalorder %s2286_s0, %s2824_s6 }
0x1150   :  { %p2292_p11 = pnand %p2290_p10, %p2287_p9 }
0x1152   :  { %2295 = shalt.err (!%p2292_p11)
}
0x1153   :  { %1808 = dma.vmem_to_hbm [thread:$0]  %s1803_s11, 256, %s2824_s6, [#allocation5], %s2330_s13, %s2330_s13, %s2331_s14   ;;  %v1746_v9 = vadd.s32 4294967288, %v2690_v56  ;;  %v1744_v11 = vsub.s32 %v2690_v56, %v2662_v38  ;;  %vm1751_vm1 = vcmask 130112   ;;  %vm1312_vm2 = vcmp.ge.s32.totalorder %v2670_v39, 0 }
0x1154   :  { %v1865_v28 = vsel %vm1312_vm2, 1.0, %v2334_v0  ;;  %vm1794_vm3 = vcmask 122880   ;;  %vm1313_vm4 = vcmp.ge.s32.totalorder %v2677_v41, 0  ;;  %s2339_s6 = smov [#allocation12]  }
0x1155   :  { %v1749_v12 = vsub.s32 %v1746_v9, %v2662_v38  ;;  %v1866_v39 = vsel %vm1313_vm4, 1.0, %v2334_v0  ;;  %s1814_s13 = sshll.u32 %s2339_s6, 4  ;;  %s1815_s13 = int_to_ptr.vmem [resolvable:$true] %s1814_s13 }
0x1156   :  { %s2296_s14 = scalar_lea.vmem %s1815_s13, 32  ;;  %p2301_p13 = scmp.lt.s32.totalorder %s1815_s13, %s1815_s13 }
0x1157   :  { %p2297_p12 = scmp.ne.s32.totalorder %s1815_s13, %s2296_s14  ;;  %p2302_p0 = scmp.lt.s32.totalorder %s2296_s14, %s2296_s14 }
0x1159   :  { %p2303_p1 = por %p2302_p0, %p2301_p13 }
0x115b   :  { %p2304_p2 = pnand %p2303_p1, %p2297_p12 }
0x11ba   :  { %v1732_v14 = vpop.permute.xlu0 %1731 }
0x11bb   :  { %v1745_v17 = vrot.slane %v1732_v14, %v1744_v11 }
0x11c0   :  { %v1738_v10 = vpop.permute.xlu1 %1737 }
0x11c1   :  { %v1756_v19 = vrot.slane %v1738_v10, %v1744_v11 }
0x11c4   :  { %v1735_v15 = vpop.permute.xlu1 %1734 }
0x11c5   :  { %v1750_v18 = vrot.slane %v1735_v15, %v1749_v12 }
0x11c7   :  { %v1752_v22 = vsel %vm1751_vm1, %v1750_v18, %v1745_v17 }
0x11c8   :  { %v1768_v27 = vrot.slane %v1752_v22, %v2718_v32 }
0x11ca   :  { %v1775_v29 = vrot.slane %v1768_v27, %v2718_v32  ;;  %v1741_v33 = vpop.permute.xlu1 %1740 }
0x11cb   :  { %v1760_v23 = vrot.slane %v1741_v33, %v1749_v12 }
0x11cc   :  { %v1792_v38 = vmul.f32 %v1865_v28, %v1775_v29 }
0x11cd   :  { %v1761_v56 = vsel %vm1751_vm1, %v1760_v23, %v1756_v19 }
0x11ce   :  { %v1782_v34 = vrot.slane %v1761_v56, %v2718_v32  ;;  %1795 = vst.msk [vmem:[#allocation12] sm:$0x1] %vm1794_vm3, %v1792_v38 }
0x11d0   :  { %v1789_v35 = vrot.slane %v1782_v34, %v2718_v32 }
0x11d2   :  { %v1793_v36 = vmul.f32 %v1866_v39, %v1789_v35 }
0x11d4   :  { %1796 = vst.msk [vmem:[#allocation12 + $0x1] sm:$0x1] %vm1794_vm3, %v1793_v36 }
0x11d5   :  { %2307 = shalt.err (!%p2304_p2)
}
0x11d6   :  { %s2308_s24 = scalar_lea.hbm %s2825_s7, 32 }
0x11d7   :  { %p2309_p3 = scmp.ne.s32.totalorder %s2825_s7, %s2308_s24  ;;  %p2312_p4 = scmp.lt.u32.totalorder %s2308_s24, %s2825_s7 }
0x11d9   :  { %p2314_p5 = pnand %p2312_p4, %p2309_p3 }
0x11db   :  { %2317 = shalt.err (!%p2314_p5)
}
0x11dc   :  { %s2340_s4 = smov 16   ;;  %s2341_s28 = smov 1  }
0x11dd   :  { %1820 = dma.vmem_to_hbm [thread:$0]  %s1815_s13, 32, %s2825_s7, [#allocation13], %s2340_s4, %s2340_s4, %s2341_s28  }
0x11de   :  { %2324 = dma.done.wait [#allocation5], 256  }
0x11df   :  { %2325 = vsyncadd [#allocation5], 4294967040 }
0x11e0   :  { %2326 = dma.done.wait [#allocation13], 32  }
0x11e1   :  { %2327 = vsyncadd [#allocation13], 4294967264 }
0x11e2   :  { %1827 = vsyncpa [#allocation4], 1 }
0x11e3   :  { %1828 = vsyncpa [#allocation7], 1 }
0x11e4   :  { %1829 = vsyncpa [#allocation10], 1 }
0x11e5   :  { %1830 = vsyncpa [#allocation5], 1 }
0x11e6   :  { %1831 = vsyncpa [#allocation13], 1 }

</bundles_post_ra>
